<compile_context>
chip_gen: v7x
topology: tpu7x:2x2x1
jax: 0.10.0
libtpu: 0.0.40
codegen_flags: <defaults>
</compile_context>

<pallas_src>
import functools

import jax
import jax.numpy as jnp
from jax import lax
from jax.experimental import pallas as pl
from jax.experimental.pallas import tpu as pltpu


def _layer_norm(x, gamma, beta, eps=1e-5):
    """LayerNorm over the last axis (PyTorch nn.LayerNorm semantics)."""
    mu = jnp.mean(x, axis=-1, keepdims=True)
    xc = x - mu
    var = jnp.mean(xc * xc, axis=-1, keepdims=True)
    return xc * lax.rsqrt(var + eps) * gamma + beta


def _encoder_layer_kernel(x_ref, pos_ref, w_in_ref, w_of_ref, w_f2_ref,
                          vec_ref, fn_ref, o_ref, acc_ref, *,
                          nhead, apply_final_norm):
    """One (batch element, layer) per grid step; f32 carry lives in acc_ref."""
    layer = pl.program_id(1)
    S, D = acc_ref.shape
    hd = D // nhead
    F = w_f2_ref.shape[0]
    bf16 = jnp.bfloat16

    # Seed the carried f32 activation from the input on the first layer.
    @pl.when(layer == 0)
    def _():
        acc_ref[...] = x_ref[...].astype(jnp.float32)

    x = acc_ref[...]                                          # (S, D) f32
    xp = x + pos_ref[...].astype(jnp.float32)                 # Q/K input

    # Packed per-layer vectors: rows = [b_in, b_out, b_f1, b_f2,
    #                                   ln1_g, ln1_b, ln2_g, ln2_b].
    vec = vec_ref[...]
    b_in = vec[0:1, 0:3 * D]
    b_out = vec[1:2, 0:D]
    b_f1 = vec[2:3, 0:F]
    b_f2 = vec[3:4, 0:D]
    ln1_g, ln1_b = vec[4:5, 0:D], vec[5:6, 0:D]
    ln2_g, ln2_b = vec[6:7, 0:D], vec[7:8, 0:D]

    # ---- QKV projections (bf16 operands, f32 accumulation).  The 1/sqrt(hd)
    # attention scale is pre-folded into the Q columns / bias by the wrapper.
    qk = jnp.dot(xp.astype(bf16), w_in_ref[:, 0:2 * D],
                 preferred_element_type=jnp.float32) + b_in[:, 0:2 * D]
    v = jnp.dot(x.astype(bf16), w_in_ref[:, 2 * D:3 * D],
                preferred_element_type=jnp.float32) + b_in[:, 2 * D:3 * D]

    # ---- head split: 2-D transpose + sublane-aligned reshape (+ one minor
    # swapaxes for Q) -> batched (H, ...) layouts, no per-head unroll.
    q3 = jnp.swapaxes(qk[:, 0:D].T.reshape(nhead, hd, S), 1, 2)   # (H, S, hd)
    k3 = qk[:, D:2 * D].T.reshape(nhead, hd, S)                   # (H, hd, S)
    v3 = v.T.reshape(nhead, hd, S)                                # (H, hd, S)

    # ---- batched attention: one QK^T and one PV dot_general over all heads.
    s = lax.dot_general(q3.astype(bf16), k3.astype(bf16),
                        (((2,), (1,)), ((0,), (0,))),
                        preferred_element_type=jnp.float32)       # (H, S, S)
    s = s - jnp.max(s, axis=-1, keepdims=True)
    p = jnp.exp(s)
    p = p * pl.reciprocal(jnp.sum(p, axis=-1, keepdims=True), approx=True)
    o = lax.dot_general(p.astype(bf16), v3.astype(bf16),
                        (((2,), (2,)), ((0,), (0,))),
                        preferred_element_type=jnp.float32)       # (H, S, hd)
    attn = jnp.swapaxes(o, 1, 2).reshape(D, S).T                  # (S, D)

    # ---- output projection + residual + LN1 ----
    attn = jnp.dot(attn.astype(bf16), w_of_ref[:, 0:D],
                   preferred_element_type=jnp.float32) + b_out
    x = _layer_norm(x + attn, ln1_g, ln1_b)

    # ---- FFN (ReLU) + residual + LN2 ----
    h = jnp.dot(x.astype(bf16), w_of_ref[:, D:D + F],
                preferred_element_type=jnp.float32) + b_f1
    h = jnp.maximum(h, 0.0)
    h = jnp.dot(h.astype(bf16), w_f2_ref[...],
                preferred_element_type=jnp.float32) + b_f2
    x = _layer_norm(x + h, ln2_g, ln2_b)

    acc_ref[...] = x   # f32 carry to the next layer

    # Only the last layer touches o_ref (optional final norm fused here).
    @pl.when(layer == pl.num_programs(1) - 1)
    def _():
        y = x
        if apply_final_norm:
            y = _layer_norm(y, fn_ref[0:1, :], fn_ref[1:2, :])
        o_ref[...] = y.astype(o_ref.dtype)


def transformer_encoder(src, params, *, nhead, pos=None, final_norm=None):
    """Forward of TransformerEncoder.

    src / pos: (S, B, D) like PyTorch (batch_first=False).
    params: per-layer weights stacked on a leading num_layers axis, in
      right-multiply layout (PyTorch nn.Linear weight W (out,in) => W.T here):
        w_in (L,D,3D)=[Wq|Wk|Wv], b_in (L,1,3D), w_out (L,D,D), b_out (L,1,D),
        w_f1 (L,D,F), b_f1 (L,1,F), w_f2 (L,F,D), b_f2 (L,1,D),
        ln (L,4,D) rows = [ln1_g, ln1_b, ln2_g, ln2_b].
    final_norm: optional (2, D) = [gamma, beta] of the encoder's final norm.
    """
    S, B, D = src.shape
    L = params["w_in"].shape[0]
    F = params["w_f1"].shape[-1]
    assert D % nhead == 0 and D % 128 == 0 and F % 128 == 0 and S % 8 == 0
    hd = D // nhead
    f32, bf16 = jnp.float32, jnp.bfloat16

    if pos is None:
        pos = jnp.zeros_like(src)

    # ---- one-time layout plumbing + weight packing (outside the layer loop).
    x_bsd = jnp.transpose(src, (1, 0, 2))                      # (B, S, D)
    p_bsd = jnp.transpose(pos, (1, 0, 2))

    scale = 1.0 / (hd ** 0.5)
    w_in = params["w_in"].astype(f32)
    b_in = params["b_in"].astype(f32)
    w_in = jnp.concatenate([w_in[..., :D] * scale, w_in[..., D:]], axis=-1)
    b_in = jnp.concatenate([b_in[..., :D] * scale, b_in[..., D:]], axis=-1)

    w_in_p = w_in.astype(bf16)                                           # (L,D,3D)
    w_of_p = jnp.concatenate([params["w_out"], params["w_f1"]],
                             axis=-1).astype(bf16)                       # (L,D,D+F)
    w_f2_p = params["w_f2"].astype(bf16)                                 # (L,F,D)

    # Pack the six small per-layer vectors into one lane-dense (8, W) slab.
    W = max(3 * D, F)
    vec = jnp.zeros((L, 8, W), f32)
    vec = vec.at[:, 0, 0:3 * D].set(b_in[:, 0, :])
    vec = vec.at[:, 1, 0:D].set(params["b_out"][:, 0, :].astype(f32))
    vec = vec.at[:, 2, 0:F].set(params["b_f1"][:, 0, :].astype(f32))
    vec = vec.at[:, 3, 0:D].set(params["b_f2"][:, 0, :].astype(f32))
    vec = vec.at[:, 4:8, 0:D].set(params["ln"].astype(f32))

    fn = (final_norm.astype(f32) if final_norm is not None
          else jnp.zeros((2, D), f32))

    kernel = functools.partial(_encoder_layer_kernel, nhead=nhead,
                               apply_final_norm=final_norm is not None)
    per_b = lambda b, l: (b, 0, 0)
    per_l = lambda b, l: (l, 0, 0)

    out = pl.pallas_call(
        kernel,
        out_shape=jax.ShapeDtypeStruct((B, S, D), src.dtype),
        grid=(B, L),
        in_specs=[
            pl.BlockSpec((None, S, D), per_b),            # src (read at layer 0)
            pl.BlockSpec((None, S, D), per_b),            # pos
            pl.BlockSpec((None, D, 3 * D), per_l),        # [Wq|Wk|Wv]   (bf16)
            pl.BlockSpec((None, D, D + F), per_l),        # [Wout|Wff1]  (bf16)
            pl.BlockSpec((None, F, D), per_l),            # Wff2         (bf16)
            pl.BlockSpec((None, 8, W), per_l),            # packed biases + LN
            pl.BlockSpec((2, D), lambda b, l: (0, 0)),    # final-norm gamma/beta
        ],
        out_specs=pl.BlockSpec((None, S, D), per_b),
        scratch_shapes=[pltpu.VMEM((S, D), jnp.float32)],  # carried activation
        compiler_params=pltpu.CompilerParams(
            dimension_semantics=("parallel", "arbitrary")),
    )(x_bsd, p_bsd, w_in_p, w_of_p, w_f2_p, vec, fn)

    return jnp.transpose(out, (1, 0, 2))


def ref_transformer_encoder(src, params, *, nhead, pos=None, final_norm=None):
    """Pure-JAX f32 reference (DETR post-norm encoder layer stack)."""
    S, B, D = src.shape
    L = params["w_in"].shape[0]
    hd = D // nhead
    if pos is None:
        pos = jnp.zeros_like(src)
    x = jnp.transpose(src, (1, 0, 2)).astype(jnp.float32)
    p = jnp.transpose(pos, (1, 0, 2)).astype(jnp.float32)
    for l in range(L):
        w_in, b_in = params["w_in"][l], params["b_in"][l]
        xp = x + p
        qk = xp @ w_in[:, :2 * D] + b_in[:, :2 * D]
        v = x @ w_in[:, 2 * D:] + b_in[:, 2 * D:]
        q = qk[..., :D].reshape(B, S, nhead, hd).transpose(0, 2, 1, 3)
        k = qk[..., D:].reshape(B, S, nhead, hd).transpose(0, 2, 1, 3)
        vh = v.reshape(B, S, nhead, hd).transpose(0, 2, 1, 3)
        s = jnp.einsum("bhqd,bhkd->bhqk", q, k) / (hd ** 0.5)
        a = jax.nn.softmax(s, axis=-1)
        o = jnp.einsum("bhqk,bhkd->bhqd", a, vh)
        o = o.transpose(0, 2, 1, 3).reshape(B, S, D)
        o = o @ params["w_out"][l] + params["b_out"][l]
        x = _layer_norm(x + o, params["ln"][l, 0:1], params["ln"][l, 1:2])
        h = jax.nn.relu(x @ params["w_f1"][l] + params["b_f1"][l])
        h = h @ params["w_f2"][l] + params["b_f2"][l]
        x = _layer_norm(x + h, params["ln"][l, 2:3], params["ln"][l, 3:4])
    if final_norm is not None:
        x = _layer_norm(x, final_norm[0:1], final_norm[1:2])
    return jnp.transpose(x, (1, 0, 2)).astype(src.dtype)


if __name__ == "__main__":
    key = jax.random.PRNGKey(0)
    ks = jax.random.split(key, 16)

    # Small, lane-friendly shapes: d_model = 128 (full lane), ffn = 256.
    S, B, D, H, F, L = 16, 2, 128, 4, 256, 2

    src = jax.random.normal(ks[0], (S, B, D), jnp.float32)
    pos = jax.random.normal(ks[1], (S, B, D), jnp.float32) * 0.1

    def nrm(k, shape, scale):
        return jax.random.normal(k, shape, jnp.float32) * scale

    ln_g = 1.0 + nrm(ks[10], (L, 2, D), 0.05)
    ln_b = nrm(ks[11], (L, 2, D), 0.02)
    params = {
        "w_in":  nrm(ks[2], (L, D, 3 * D), D ** -0.5),
        "b_in":  nrm(ks[3], (L, 1, 3 * D), 0.02),
        "w_out": nrm(ks[4], (L, D, D), D ** -0.5),
        "b_out": nrm(ks[5], (L, 1, D), 0.02),
        "w_f1":  nrm(ks[6], (L, D, F), D ** -0.5),
        "b_f1":  nrm(ks[7], (L, 1, F), 0.02),
        "w_f2":  nrm(ks[8], (L, F, D), F ** -0.5),
        "b_f2":  nrm(ks[9], (L, 1, D), 0.02),
        "ln":    jnp.stack([ln_g[:, 0], ln_b[:, 0], ln_g[:, 1], ln_b[:, 1]],
                           axis=1),                      # (L, 4, D)
    }
    final_norm = jnp.stack([1.0 + nrm(ks[12], (D,), 0.05),
                            nrm(ks[13], (D,), 0.02)], axis=0)   # (2, D)

    out = jax.block_until_ready(
        transformer_encoder(src, params, nhead=H, pos=pos,
                            final_norm=final_norm))
    assert out.shape == (S, B, D), out.shape

    ref = jax.block_until_ready(
        ref_transformer_encoder(src, params, nhead=H, pos=pos,
                                final_norm=final_norm))
    # bf16 matmul operands + approx reciprocal => slightly looser tolerance
    # than the all-f32 reference.
    max_err = float(jnp.max(jnp.abs(out - ref)))
    assert max_err < 3e-2, f"max abs err {max_err}"

    print("KERNEL_OK")
</pallas_src>

<mosaic_0001>
module attributes {stable_mosaic.version = 11 : i64} {
  func.func @_encoder_layer_kernel(%arg0: i32, %arg1: i32, %arg2: memref<1x16x128xf32, #tpu.memory_space<vmem>>, %arg3: memref<1x16x128xf32, #tpu.memory_space<vmem>>, %arg4: memref<1x128x384xbf16, #tpu.memory_space<vmem>>, %arg5: memref<1x128x384xbf16, #tpu.memory_space<vmem>>, %arg6: memref<1x256x128xbf16, #tpu.memory_space<vmem>>, %arg7: memref<1x8x384xf32, #tpu.memory_space<vmem>>, %arg8: memref<2x128xf32, #tpu.memory_space<vmem>>, %arg9: memref<1x16x128xf32, #tpu.memory_space<vmem>>, %arg10: memref<16x128xf32, #tpu.memory_space<vmem>>) attributes {dimension_semantics = [#tpu.dimension_semantics<parallel>, #tpu.dimension_semantics<arbitrary>], iteration_bounds = array<i64: 2, 2>, scalar_prefetch = 0 : i64, scratch_operands = 1 : i64, tpu.core_type = #tpu.core_type<tc>, window_params = [{transform_indices = @transform_0, window_bounds = array<i64: 1, 16, 128>}, {transform_indices = @transform_1, window_bounds = array<i64: 1, 16, 128>}, {transform_indices = @transform_2, window_bounds = array<i64: 1, 128, 384>}, {transform_indices = @transform_3, window_bounds = array<i64: 1, 128, 384>}, {transform_indices = @transform_4, window_bounds = array<i64: 1, 256, 128>}, {transform_indices = @transform_5, window_bounds = array<i64: 1, 8, 384>}, {pipeline_mode = #tpu.pipeline_mode<synchronous>, transform_indices = @transform_6, window_bounds = array<i64: 2, 128>}, {transform_indices = @transform_7, window_bounds = array<i64: 1, 16, 128>}]} {
    %c0_i32 = arith.constant 0 : i32
    %0 = arith.cmpi eq, %arg1, %c0_i32 : i32
    %1 = arith.extui %0 : i1 to i32
    %c0_i32_0 = arith.constant 0 : i32
    %2 = arith.cmpi ne, %1, %c0_i32_0 : i32
    scf.if %2 {
      %c0_43 = arith.constant 0 : index
      %c0_44 = arith.constant 0 : index
      %c0_45 = arith.constant 0 : index
      %125 = vector.load %arg2[%c0_43, %c0_44, %c0_45] : memref<1x16x128xf32, #tpu.memory_space<vmem>>, vector<1x16x128xf32>
      %126 = vector.shape_cast %125 : vector<1x16x128xf32> to vector<16x128xf32>
      %c0_46 = arith.constant 0 : index
      %c0_47 = arith.constant 0 : index
      %127 = vector.load %arg10[%c0_46, %c0_47] : memref<16x128xf32, #tpu.memory_space<vmem>>, vector<16x128xf32>
      tpu.vector_store %arg10[%c0_46, %c0_47], %126 {strides = array<i32>} : memref<16x128xf32, #tpu.memory_space<vmem>>, vector<16x128xf32>,
    } else {
    }
    %c0 = arith.constant 0 : index
    %c0_1 = arith.constant 0 : index
    %3 = vector.load %arg10[%c0, %c0_1] : memref<16x128xf32, #tpu.memory_space<vmem>>, vector<16x128xf32>
    %c0_2 = arith.constant 0 : index
    %c0_3 = arith.constant 0 : index
    %c0_4 = arith.constant 0 : index
    %4 = vector.load %arg3[%c0_2, %c0_3, %c0_4] : memref<1x16x128xf32, #tpu.memory_space<vmem>>, vector<1x16x128xf32>
    %5 = vector.shape_cast %4 : vector<1x16x128xf32> to vector<16x128xf32>
    %6 = arith.addf %3, %5 : vector<16x128xf32>
    %c0_5 = arith.constant 0 : index
    %c0_6 = arith.constant 0 : index
    %c0_7 = arith.constant 0 : index
    %7 = vector.load %arg7[%c0_5, %c0_6, %c0_7] : memref<1x8x384xf32, #tpu.memory_space<vmem>>, vector<1x8x384xf32>
    %8 = vector.shape_cast %7 : vector<1x8x384xf32> to vector<8x384xf32>
    %9 = vector.extract_strided_slice %8 {offsets = [0, 0], sizes = [1, 384], strides = [1, 1]} : vector<8x384xf32> to vector<1x384xf32>
    %10 = vector.extract_strided_slice %8 {offsets = [1, 0], sizes = [1, 128], strides = [1, 1]} : vector<8x384xf32> to vector<1x128xf32>
    %11 = vector.extract_strided_slice %8 {offsets = [2, 0], sizes = [1, 256], strides = [1, 1]} : vector<8x384xf32> to vector<1x256xf32>
    %12 = vector.extract_strided_slice %8 {offsets = [3, 0], sizes = [1, 128], strides = [1, 1]} : vector<8x384xf32> to vector<1x128xf32>
    %13 = vector.extract_strided_slice %8 {offsets = [4, 0], sizes = [1, 128], strides = [1, 1]} : vector<8x384xf32> to vector<1x128xf32>
    %14 = vector.extract_strided_slice %8 {offsets = [5, 0], sizes = [1, 128], strides = [1, 1]} : vector<8x384xf32> to vector<1x128xf32>
    %15 = vector.extract_strided_slice %8 {offsets = [6, 0], sizes = [1, 128], strides = [1, 1]} : vector<8x384xf32> to vector<1x128xf32>
    %16 = vector.extract_strided_slice %8 {offsets = [7, 0], sizes = [1, 128], strides = [1, 1]} : vector<8x384xf32> to vector<1x128xf32>
    %17 = arith.truncf %6 : vector<16x128xf32> to vector<16x128xbf16>
    %c0_8 = arith.constant 0 : index
    %c0_9 = arith.constant 0 : index
    %c0_10 = arith.constant 0 : index
    %18 = vector.load %arg4[%c0_8, %c0_9, %c0_10] : memref<1x128x384xbf16, #tpu.memory_space<vmem>>, vector<1x128x256xbf16>
    %19 = vector.shape_cast %18 : vector<1x128x256xbf16> to vector<128x256xbf16>
    %cst = arith.constant dense<0.000000e+00> : vector<16x256xf32>
    %20 = tpu.matmul %17, %19, %cst {dimension_numbers = #tpu.dot_dimension_numbers<[1], [0], [0], [1], [0, 0, 1, 1], [], []>} : vector<16x128xbf16>, vector<128x256xbf16>, vector<16x256xf32> -> vector<16x256xf32>
    %21 = vector.extract_strided_slice %9 {offsets = [0, 0], sizes = [1, 256], strides = [1, 1]} : vector<1x384xf32> to vector<1x256xf32>
    %22 = vector.broadcast %21 : vector<1x256xf32> to vector<16x256xf32>
    %23 = arith.addf %20, %22 : vector<16x256xf32>
    %24 = arith.truncf %3 : vector<16x128xf32> to vector<16x128xbf16>
    %c0_11 = arith.constant 0 : index
    %c0_12 = arith.constant 0 : index
    %c256 = arith.constant 256 : index
    %25 = vector.load %arg4[%c0_11, %c0_12, %c256] : memref<1x128x384xbf16, #tpu.memory_space<vmem>>, vector<1x128x128xbf16>
    %26 = vector.shape_cast %25 : vector<1x128x128xbf16> to vector<128x128xbf16>
    %cst_13 = arith.constant dense<0.000000e+00> : vector<16x128xf32>
    %27 = tpu.matmul %24, %26, %cst_13 {dimension_numbers = #tpu.dot_dimension_numbers<[1], [0], [0], [1], [0, 0, 1, 1], [], []>} : vector<16x128xbf16>, vector<128x128xbf16>, vector<16x128xf32> -> vector<16x128xf32>
    %28 = vector.extract_strided_slice %9 {offsets = [0, 256], sizes = [1, 128], strides = [1, 1]} : vector<1x384xf32> to vector<1x128xf32>
    %29 = vector.broadcast %28 : vector<1x128xf32> to vector<16x128xf32>
    %30 = arith.addf %27, %29 : vector<16x128xf32>
    %31 = vector.extract_strided_slice %23 {offsets = [0, 0], sizes = [16, 128], strides = [1, 1]} : vector<16x256xf32> to vector<16x128xf32>
    %32 = tpu.transpose %31, [1, 0] : vector<16x128xf32> -> vector<128x16xf32>
    %33 = vector.shape_cast %32 : vector<128x16xf32> to vector<4x32x16xf32>
    %34 = tpu.transpose %33, [0, 2, 1] : vector<4x32x16xf32> -> vector<4x16x32xf32>
    %35 = vector.extract_strided_slice %23 {offsets = [0, 128], sizes = [16, 128], strides = [1, 1]} : vector<16x256xf32> to vector<16x128xf32>
    %36 = tpu.transpose %35, [1, 0] : vector<16x128xf32> -> vector<128x16xf32>
    %37 = vector.shape_cast %36 : vector<128x16xf32> to vector<4x32x16xf32>
    %38 = tpu.transpose %30, [1, 0] : vector<16x128xf32> -> vector<128x16xf32>
    %39 = vector.shape_cast %38 : vector<128x16xf32> to vector<4x32x16xf32>
    %40 = arith.truncf %34 : vector<4x16x32xf32> to vector<4x16x32xbf16>
    %41 = arith.truncf %37 : vector<4x32x16xf32> to vector<4x32x16xbf16>
    %cst_14 = arith.constant dense<0.000000e+00> : vector<4x16x16xf32>
    %42 = tpu.matmul %40, %41, %cst_14 {dimension_numbers = #tpu.dot_dimension_numbers<[2], [1], [1], [2], [0, 0, 0, 1, 1, 2], [0], [0]>} : vector<4x16x32xbf16>, vector<4x32x16xbf16>, vector<4x16x16xf32> -> vector<4x16x16xf32>
    %cst_15 = arith.constant dense<0xFF800000> : vector<4x16xf32>
    %43 = vector.multi_reduction <maximumf>, %42, %cst_15 [2] : vector<4x16x16xf32> to vector<4x16xf32>
    %44 = vector.shape_cast %43 : vector<4x16xf32> to vector<4x16x1xf32>
    %45 = vector.broadcast %44 : vector<4x16x1xf32> to vector<4x16x16xf32>
    %46 = arith.subf %42, %45 : vector<4x16x16xf32>
    %47 = math.exp %46 : vector<4x16x16xf32>
    %cst_16 = arith.constant dense<0.000000e+00> : vector<4x16xf32>
    %48 = vector.multi_reduction <add>, %47, %cst_16 [2] : vector<4x16x16xf32> to vector<4x16xf32>
    %49 = vector.shape_cast %48 : vector<4x16xf32> to vector<4x16x1xf32>
    %50 = tpu.reciprocal %49 {approx = true} : vector<4x16x1xf32> -> vector<4x16x1xf32>
    %51 = vector.broadcast %50 : vector<4x16x1xf32> to vector<4x16x16xf32>
    %52 = arith.mulf %47, %51 : vector<4x16x16xf32>
    %53 = arith.truncf %52 : vector<4x16x16xf32> to vector<4x16x16xbf16>
    %54 = arith.truncf %39 : vector<4x32x16xf32> to vector<4x32x16xbf16>
    %cst_17 = arith.constant dense<0.000000e+00> : vector<4x16x32xf32>
    %55 = tpu.matmul %53, %54, %cst_17 {dimension_numbers = #tpu.dot_dimension_numbers<[2], [2], [1], [1], [0, 0, 0, 1, 1, 1], [0], [0]>} : vector<4x16x16xbf16>, vector<4x32x16xbf16>, vector<4x16x32xf32> -> vector<4x16x32xf32>
    %56 = tpu.transpose %55, [0, 2, 1] : vector<4x16x32xf32> -> vector<4x32x16xf32>
    %57 = vector.shape_cast %56 : vector<4x32x16xf32> to vector<128x16xf32>
    %58 = tpu.transpose %57, [1, 0] : vector<128x16xf32> -> vector<16x128xf32>
    %59 = arith.truncf %58 : vector<16x128xf32> to vector<16x128xbf16>
    %c0_18 = arith.constant 0 : index
    %c0_19 = arith.constant 0 : index
    %c0_20 = arith.constant 0 : index
    %60 = vector.load %arg5[%c0_18, %c0_19, %c0_20] : memref<1x128x384xbf16, #tpu.memory_space<vmem>>, vector<1x128x128xbf16>
    %61 = vector.shape_cast %60 : vector<1x128x128xbf16> to vector<128x128xbf16>
    %cst_21 = arith.constant dense<0.000000e+00> : vector<16x128xf32>
    %62 = tpu.matmul %59, %61, %cst_21 {dimension_numbers = #tpu.dot_dimension_numbers<[1], [0], [0], [1], [0, 0, 1, 1], [], []>} : vector<16x128xbf16>, vector<128x128xbf16>, vector<16x128xf32> -> vector<16x128xf32>
    %63 = vector.broadcast %10 : vector<1x128xf32> to vector<16x128xf32>
    %64 = arith.addf %62, %63 : vector<16x128xf32>
    %65 = arith.addf %3, %64 : vector<16x128xf32>
    %cst_22 = arith.constant dense<0.000000e+00> : vector<16xf32>
    %66 = vector.multi_reduction <add>, %65, %cst_22 [1] : vector<16x128xf32> to vector<16xf32>
    %67 = vector.shape_cast %66 : vector<16xf32> to vector<16x1xf32>
    %cst_23 = arith.constant 1.280000e+02 : f32
    %68 = vector.broadcast %cst_23 : f32 to vector<16x1xf32>
    %69 = arith.divf %67, %68 : vector<16x1xf32>
    %70 = vector.broadcast %69 : vector<16x1xf32> to vector<16x128xf32>
    %71 = arith.subf %65, %70 : vector<16x128xf32>
    %72 = arith.mulf %71, %71 : vector<16x128xf32>
    %cst_24 = arith.constant dense<0.000000e+00> : vector<16xf32>
    %73 = vector.multi_reduction <add>, %72, %cst_24 [1] : vector<16x128xf32> to vector<16xf32>
    %74 = vector.shape_cast %73 : vector<16xf32> to vector<16x1xf32>
    %cst_25 = arith.constant 1.280000e+02 : f32
    %75 = vector.broadcast %cst_25 : f32 to vector<16x1xf32>
    %76 = arith.divf %74, %75 : vector<16x1xf32>
    %cst_26 = arith.constant 9.99999974E-6 : f32
    %77 = vector.broadcast %cst_26 : f32 to vector<16x1xf32>
    %78 = arith.addf %76, %77 : vector<16x1xf32>
    %79 = math.rsqrt %78 : vector<16x1xf32>
    %80 = vector.broadcast %79 : vector<16x1xf32> to vector<16x128xf32>
    %81 = arith.mulf %71, %80 : vector<16x128xf32>
    %82 = vector.broadcast %13 : vector<1x128xf32> to vector<16x128xf32>
    %83 = arith.mulf %81, %82 : vector<16x128xf32>
    %84 = vector.broadcast %14 : vector<1x128xf32> to vector<16x128xf32>
    %85 = arith.addf %83, %84 : vector<16x128xf32>
    %86 = arith.truncf %85 : vector<16x128xf32> to vector<16x128xbf16>
    %c0_27 = arith.constant 0 : index
    %c0_28 = arith.constant 0 : index
    %c128 = arith.constant 128 : index
    %87 = vector.load %arg5[%c0_27, %c0_28, %c128] : memref<1x128x384xbf16, #tpu.memory_space<vmem>>, vector<1x128x256xbf16>
    %88 = vector.shape_cast %87 : vector<1x128x256xbf16> to vector<128x256xbf16>
    %cst_29 = arith.constant dense<0.000000e+00> : vector<16x256xf32>
    %89 = tpu.matmul %86, %88, %cst_29 {dimension_numbers = #tpu.dot_dimension_numbers<[1], [0], [0], [1], [0, 0, 1, 1], [], []>} : vector<16x128xbf16>, vector<128x256xbf16>, vector<16x256xf32> -> vector<16x256xf32>
    %90 = vector.broadcast %11 : vector<1x256xf32> to vector<16x256xf32>
    %91 = arith.addf %89, %90 : vector<16x256xf32>
    %cst_30 = arith.constant 0.000000e+00 : f32
    %92 = vector.broadcast %cst_30 : f32 to vector<16x256xf32>
    %93 = arith.maximumf %91, %92 : vector<16x256xf32>
    %94 = arith.truncf %93 : vector<16x256xf32> to vector<16x256xbf16>
    %c0_31 = arith.constant 0 : index
    %c0_32 = arith.constant 0 : index
    %c0_33 = arith.constant 0 : index
    %95 = vector.load %arg6[%c0_31, %c0_32, %c0_33] : memref<1x256x128xbf16, #tpu.memory_space<vmem>>, vector<1x256x128xbf16>
    %96 = vector.shape_cast %95 : vector<1x256x128xbf16> to vector<256x128xbf16>
    %cst_34 = arith.constant dense<0.000000e+00> : vector<16x128xf32>
    %97 = tpu.matmul %94, %96, %cst_34 {dimension_numbers = #tpu.dot_dimension_numbers<[1], [0], [0], [1], [0, 0, 1, 1], [], []>} : vector<16x256xbf16>, vector<256x128xbf16>, vector<16x128xf32> -> vector<16x128xf32>
    %98 = vector.broadcast %12 : vector<1x128xf32> to vector<16x128xf32>
    %99 = arith.addf %97, %98 : vector<16x128xf32>
    %100 = arith.addf %85, %99 : vector<16x128xf32>
    %cst_35 = arith.constant dense<0.000000e+00> : vector<16xf32>
    %101 = vector.multi_reduction <add>, %100, %cst_35 [1] : vector<16x128xf32> to vector<16xf32>
    %102 = vector.shape_cast %101 : vector<16xf32> to vector<16x1xf32>
    %cst_36 = arith.constant 1.280000e+02 : f32
    %103 = vector.broadcast %cst_36 : f32 to vector<16x1xf32>
    %104 = arith.divf %102, %103 : vector<16x1xf32>
    %105 = vector.broadcast %104 : vector<16x1xf32> to vector<16x128xf32>
    %106 = arith.subf %100, %105 : vector<16x128xf32>
    %107 = arith.mulf %106, %106 : vector<16x128xf32>
    %cst_37 = arith.constant dense<0.000000e+00> : vector<16xf32>
    %108 = vector.multi_reduction <add>, %107, %cst_37 [1] : vector<16x128xf32> to vector<16xf32>
    %109 = vector.shape_cast %108 : vector<16xf32> to vector<16x1xf32>
    %cst_38 = arith.constant 1.280000e+02 : f32
    %110 = vector.broadcast %cst_38 : f32 to vector<16x1xf32>
    %111 = arith.divf %109, %110 : vector<16x1xf32>
    %cst_39 = arith.constant 9.99999974E-6 : f32
    %112 = vector.broadcast %cst_39 : f32 to vector<16x1xf32>
    %113 = arith.addf %111, %112 : vector<16x1xf32>
    %114 = math.rsqrt %113 : vector<16x1xf32>
    %115 = vector.broadcast %114 : vector<16x1xf32> to vector<16x128xf32>
    %116 = arith.mulf %106, %115 : vector<16x128xf32>
    %117 = vector.broadcast %15 : vector<1x128xf32> to vector<16x128xf32>
    %118 = arith.mulf %116, %117 : vector<16x128xf32>
    %119 = vector.broadcast %16 : vector<1x128xf32> to vector<16x128xf32>
    %120 = arith.addf %118, %119 : vector<16x128xf32>
    %c0_40 = arith.constant 0 : index
    %c0_41 = arith.constant 0 : index
    %121 = vector.load %arg10[%c0_40, %c0_41] : memref<16x128xf32, #tpu.memory_space<vmem>>, vector<16x128xf32>
    tpu.vector_store %arg10[%c0_40, %c0_41], %120 {strides = array<i32>} : memref<16x128xf32, #tpu.memory_space<vmem>>, vector<16x128xf32>,
    %c1_i32 = arith.constant 1 : i32
    %122 = arith.cmpi eq, %arg1, %c1_i32 : i32
    %123 = arith.extui %122 : i1 to i32
    %c0_i32_42 = arith.constant 0 : i32
    %124 = arith.cmpi ne, %123, %c0_i32_42 : i32
    scf.if %124 {
      %c0_43 = arith.constant 0 : index
      %c0_44 = arith.constant 0 : index
      %125 = vector.load %arg8[%c0_43, %c0_44] : memref<2x128xf32, #tpu.memory_space<vmem>>, vector<1x128xf32>
      %c1 = arith.constant 1 : index
      %c0_45 = arith.constant 0 : index
      %126 = vector.load %arg8[%c1, %c0_45] : memref<2x128xf32, #tpu.memory_space<vmem>>, vector<1x128xf32>
      %cst_46 = arith.constant dense<0.000000e+00> : vector<16xf32>
      %127 = vector.multi_reduction <add>, %120, %cst_46 [1] : vector<16x128xf32> to vector<16xf32>
      %128 = vector.shape_cast %127 : vector<16xf32> to vector<16x1xf32>
      %cst_47 = arith.constant 1.280000e+02 : f32
      %129 = vector.broadcast %cst_47 : f32 to vector<16x1xf32>
      %130 = arith.divf %128, %129 : vector<16x1xf32>
      %131 = vector.broadcast %130 : vector<16x1xf32> to vector<16x128xf32>
      %132 = arith.subf %120, %131 : vector<16x128xf32>
      %133 = arith.mulf %132, %132 : vector<16x128xf32>
      %cst_48 = arith.constant dense<0.000000e+00> : vector<16xf32>
      %134 = vector.multi_reduction <add>, %133, %cst_48 [1] : vector<16x128xf32> to vector<16xf32>
      %135 = vector.shape_cast %134 : vector<16xf32> to vector<16x1xf32>
      %cst_49 = arith.constant 1.280000e+02 : f32
      %136 = vector.broadcast %cst_49 : f32 to vector<16x1xf32>
      %137 = arith.divf %135, %136 : vector<16x1xf32>
      %cst_50 = arith.constant 9.99999974E-6 : f32
      %138 = vector.broadcast %cst_50 : f32 to vector<16x1xf32>
      %139 = arith.addf %137, %138 : vector<16x1xf32>
      %140 = math.rsqrt %139 : vector<16x1xf32>
      %141 = vector.broadcast %140 : vector<16x1xf32> to vector<16x128xf32>
      %142 = arith.mulf %132, %141 : vector<16x128xf32>
      %143 = vector.broadcast %125 : vector<1x128xf32> to vector<16x128xf32>
      %144 = arith.mulf %142, %143 : vector<16x128xf32>
      %145 = vector.broadcast %126 : vector<1x128xf32> to vector<16x128xf32>
      %146 = arith.addf %144, %145 : vector<16x128xf32>
      %c0_51 = arith.constant 0 : index
      %c0_52 = arith.constant 0 : index
      %c0_53 = arith.constant 0 : index
      %147 = vector.load %arg9[%c0_51, %c0_52, %c0_53] : memref<1x16x128xf32, #tpu.memory_space<vmem>>, vector<1x16x128xf32>
      %148 = vector.shape_cast %147 : vector<1x16x128xf32> to vector<16x128xf32>
      %149 = vector.shape_cast %146 : vector<16x128xf32> to vector<1x16x128xf32>
      tpu.vector_store %arg9[%c0_51, %c0_52, %c0_53], %149 {strides = array<i32>} : memref<1x16x128xf32, #tpu.memory_space<vmem>>, vector<1x16x128xf32>,
    } else {
    }
    return
  }
  func.func @transform_0(%arg0: i32, %arg1: i32) -> (i32, i32, i32) {
    %c0_i32 = arith.constant 0 : i32
    %c0_i32_0 = arith.constant 0 : i32
    %c0_i32_1 = arith.constant 0 : i32
    return %arg0, %c0_i32, %c0_i32_0 : i32, i32, i32
  }
  func.func @transform_1(%arg0: i32, %arg1: i32) -> (i32, i32, i32) {
    %c0_i32 = arith.constant 0 : i32
    %c0_i32_0 = arith.constant 0 : i32
    %c0_i32_1 = arith.constant 0 : i32
    return %arg0, %c0_i32, %c0_i32_0 : i32, i32, i32
  }
  func.func @transform_2(%arg0: i32, %arg1: i32) -> (i32, i32, i32) {
    %c0_i32 = arith.constant 0 : i32
    %c0_i32_0 = arith.constant 0 : i32
    %c0_i32_1 = arith.constant 0 : i32
    return %arg1, %c0_i32, %c0_i32_0 : i32, i32, i32
  }
  func.func @transform_3(%arg0: i32, %arg1: i32) -> (i32, i32, i32) {
    %c0_i32 = arith.constant 0 : i32
    %c0_i32_0 = arith.constant 0 : i32
    %c0_i32_1 = arith.constant 0 : i32
    return %arg1, %c0_i32, %c0_i32_0 : i32, i32, i32
  }
  func.func @transform_4(%arg0: i32, %arg1: i32) -> (i32, i32, i32) {
    %c0_i32 = arith.constant 0 : i32
    %c0_i32_0 = arith.constant 0 : i32
    %c0_i32_1 = arith.constant 0 : i32
    return %arg1, %c0_i32, %c0_i32_0 : i32, i32, i32
  }
  func.func @transform_5(%arg0: i32, %arg1: i32) -> (i32, i32, i32) {
    %c0_i32 = arith.constant 0 : i32
    %c0_i32_0 = arith.constant 0 : i32
    %c0_i32_1 = arith.constant 0 : i32
    return %arg1, %c0_i32, %c0_i32_0 : i32, i32, i32
  }
  func.func @transform_6(%arg0: i32, %arg1: i32) -> (i32, i32) {
    %c0_i32 = arith.constant 0 : i32
    %c0_i32_0 = arith.constant 0 : i32
    %c0_i32_1 = arith.constant 0 : i32
    return %c0_i32, %c0_i32_0 : i32, i32
  }
  func.func @transform_7(%arg0: i32, %arg1: i32) -> (i32, i32, i32) {
    %c0_i32 = arith.constant 0 : i32
    %c0_i32_0 = arith.constant 0 : i32
    %c0_i32_1 = arith.constant 0 : i32
    return %arg0, %c0_i32, %c0_i32_0 : i32, i32, i32
  }
}

</mosaic_0001>

<bundles_post_ra>
// kernel: tpu_custom_call.1
= control target key start
LH: loop header
LB: loop body
LE: loop exit
PB: predicated region body
PF: predicated region fallthrough
CT: control target
= control target key end

     0   :  { %s4162_s0 = inlined_call_operand.hbm [shape: f32[2,16,128], index: 0, kind: input, shape index: {}]   ;;  %s4163_s1 = inlined_call_operand.hbm [shape: f32[2,16,128], index: 1, kind: input, shape index: {}]   ;;  %s4164_s2 = inlined_call_operand.hbm [shape: bf16[2,128,384], index: 2, kind: input, shape index: {}]   ;;  %s4165_s3 = inlined_call_operand.hbm [shape: bf16[2,128,384], index: 3, kind: input, shape index: {}]   ;;  %s4166_s4 = inlined_call_operand.hbm [shape: bf16[2,256,128], index: 4, kind: input, shape index: {}]   ;;  %s4167_s5 = inlined_call_operand.hbm [shape: f32[2,8,384], index: 5, kind: input, shape index: {}]   ;;  %s4168_s6 = inlined_call_operand.vmem [shape: f32[2,128], index: 6, kind: input, shape index: {}]   ;;  %s4169_s7 = inlined_call_operand.hbm [shape: f32[2,16,128], index: 7, kind: output, shape index: {}]  }
   0x1   :  { %4203 = sst [smem:[#allocation34_spill]] %s4163_s1 }
   0x2   :  { %4204 = sst [smem:[#allocation35_spill]] %s4165_s3 }
   0x3   :  { %4205 = sst [smem:[#allocation36_spill]] %s4168_s6 }
   0x4   :  { %4206 = sst [smem:[#allocation37_spill]] %s4169_s7 }
   0x5   :  { %12 = vsyncpa [#allocation4], 0 }
   0x6   :  { %14 = vsyncpa [#allocation4 + $0x1], 0 }
   0x7   :  { %15 = vsyncpa [#allocation7], 0 }
   0x8   :  { %17 = vsyncpa [#allocation7 + $0x1], 0 }
   0x9   :  { %18 = vsyncpa [#allocation10], 0 }
   0xa   :  { %20 = vsyncpa [#allocation10 + $0x1], 0 }
   0xb   :  { %21 = vsyncpa [#allocation13], 0 }
   0xc   :  { %23 = vsyncpa [#allocation13 + $0x1], 0 }
   0xd   :  { %24 = vsyncpa [#allocation5], 0 }
   0xe   :  { %26 = vsyncpa [#allocation5 + $0x1], 0  ;;  %s3422_s24 = smov 0   ;;  %s3424_s25 = smov 0  }
   0xf   :  { %s3426_s26 = smov 0   ;;  %s3428_s27 = smov 0  }
  0x10   :  { %s3430_s28 = smov 0   ;;  %s3432_s29 = smov 0  }
  0x11   :  { %s3434_s30 = smov 0   ;;  %s3436_s8 = smov 0  }
  0x12   :  { %s3438_s9 = smov 0   ;;  %s3440_s10 = smov 0  }
  0x13   :  { %s3442_s11 = smov 0  }
  0x14 LB: > { %4207 = sst [smem:[#allocation21_spill]] %s3326_s25  ;;  %s3478_s12 = sadd.s32 4294967295, %s3362_s11   ;;  %s3362_s11 = sphi %s3442_s11, %s32_s11   ;;  %s3358_s10 = sphi %s3440_s10, %s4280_s10   ;;  %s3354_s9 = sphi %s3438_s9, %s4279_s9   ;;  %s3350_s8 = sphi %s3436_s8, %s4278_s8   ;;  %s3346_s30 = sphi %s3434_s30, %s4277_s30   ;;  %s3342_s29 = sphi %s3432_s29, %s4276_s29   ;;  %s3338_s28 = sphi %s3430_s28, %s4275_s28   ;;  %s3334_s27 = sphi %s3428_s27, %s4274_s27   ;;  %s3330_s26 = sphi %s3426_s26, %s4270_s26   ;;  %s3326_s25 = sphi %s3424_s25, %s4269_s25   ;;  %s3322_s24 = sphi %s3422_s24, %s4268_s24  }
  0x15   : > { %4208 = sst [smem:[#allocation22_spill]] %s3330_s26  ;;  %s2413_s13 = sadd.s32 4294967294, %s3362_s11  }
  0x16   : > { %4209 = sst [smem:[#allocation23_spill]] %s3334_s27  ;;  %p58_p0 = scmp.ne.s32.totalorder %s3342_s29, %s3338_s28 }
  0x17   : > { %4210 = sst [smem:[#allocation24_spill]] %s3346_s30  ;;  %p4179_p1 = scmp.eq.s32.totalorder %s3362_s11, 0 }
  0x18   : > { %4211 = sst [smem:[#allocation25_spill]] %s3350_s8  ;;  %p64_p2 = scmp.ne.s32.totalorder %s3338_s28, %s3334_s27 }
  0x19   : > { %4212 = sst [smem:[#allocation26_spill]] %s3362_s11  ;;  %p4178_p3 = scmp.eq.s32.totalorder %s3478_s12, 0 }
  0x1a   : > { %p60_p4 = por %p4179_p1, %p58_p0  ;;  %p239_p5 = scmp.eq.s32.totalorder %s3478_s12, 3 }
  0x1b   : > { %p3494_p6 = por %p4178_p3, %p64_p2  ;;  %p245_p7 = scmp.eq.s32.totalorder %s2413_s13, 3 }
  0x1c   : > { %p3498_p8 = por %p239_p5, %p58_p0  ;;  %p4177_p10 = scmp.lt.s32.totalorder %s3362_s11, 4 }
  0x1d   : > { %s4213_s16 = scalar_select %p3494_p6, 1, 0 }
  0x1e   : > { %s4214_s17 = scalar_select %p3498_p8, 1, 0 }
  0x1f   : > { %p3502_p9 = por %p245_p7, %p64_p2  ;;  %s4170_s19 = sand.u32 1, %s3342_s29  }
  0x20   : > { %4215 = sst [smem:[#allocation27_spill]] %s4214_s17  ;;  %s4174_s20 = sshll.u32 %s3358_s10, 8 }
  0x21   : > { %s4216_s18 = scalar_select %p3502_p9, 1, 0 }
  0x22   : > { %s3511_s21 = sshll.u32 %s4170_s19, 4  ;;  %p3515_p11 = pnand %p4177_p10, %p60_p4 }
  0x23   : > { %4217 = sst [smem:[#allocation28_spill]] %s4216_s18  ;;  %s4180_s23 = sand.u32 1, %s3362_s11  }
  0x24   : > { %s4218_s22 = scalar_select %p3515_p11, 1, 0 }
  0x25   : > { %s4219_s1 = sld [smem:[#allocation34_spill]]  ;;  %s293_s19 = scalar_lea.vmem [#allocation6], %s3511_s21 }
  0x26   : > { %s300_s18 = sshll.u32 %s293_s19, 4  ;;  %s3533_s27 = scalar_lea.sflag [#allocation7], %s4180_s23  ;;  %s3528_s18 = int_to_ptr.vmem [resolvable:$true] %s300_s18 }
  0x27   : > { %p4184_p0 = pneg %p3515_p11 }
  0x2b   : > { %s3525_s14 = scalar_lea.hbm %s4219_s1, %s4174_s20  ;;  %s3049_s20 = scalar_lea.hbm %s4219_s1, 512 }
  0x2c   : > { %s3044_s7 = scalar_lea.hbm %s3525_s14, 256  ;;  %p3050_p5 = scmp.lt.u32.totalorder %s3525_s14, %s4219_s1 }
  0x2d   : > { %p3045_p13 = scmp.ne.s32.totalorder %s3525_s14, %s3044_s7  ;;  %p3051_p7 = scmp.lt.u32.totalorder %s3049_s20, %s3044_s7 }
  0x2e   : > { %p3053_p3 = scmp.lt.u32.totalorder %s3044_s7, %s3525_s14 }
  0x2f   : > { %p3047_p2 = pnand %p4184_p0, %p3045_p13  ;;  %p3052_p10 = por %p3051_p7, %p3050_p5 }
  0x31   : > { %p3048_p4 = pneg %p3047_p2  ;;  %p3054_p1 = por %p3053_p3, %p3052_p10 }
  0x33   : > { %p3055_p12 = pnand %p3054_p1, %p3048_p4 }
  0x35   : > { %3058 = shalt.err (!%p3055_p12)
}
  0x36   : > { %s3059_s23 = scalar_lea.vmem %s3528_s18, 256  ;;  %s3364_s15 = smov [#allocation6]  }
  0x37   : > { %p3060_p13 = scmp.ne.s32.totalorder %s3528_s18, %s3059_s23  ;;  %s3064_s13 = sshll.u32 %s3364_s15, 4  ;;  %s3065_s13 = int_to_ptr.vmem [resolvable:$false] %s3064_s13 }
  0x38   : > { %s3066_s17 = scalar_lea.vmem %s3065_s13, 512  ;;  %p3067_p8 = scmp.lt.s32.totalorder %s3528_s18, %s3065_s13 }
  0x39   : > { %p3062_p2 = pnand %p3060_p13, %p4184_p0  ;;  %p3068_p5 = scmp.lt.s32.totalorder %s3066_s17, %s3059_s23 }
  0x3b   : > { %p3063_p9 = pneg %p3062_p2  ;;  %p3069_p7 = por %p3068_p5, %p3067_p8 }
  0x3d   : > { %p3070_p3 = pnand %p3069_p7, %p3063_p9 }
  0x3f   : > { %3073 = shalt.err (!%p3070_p3)
}
  0x40   : > { %s4182_s7 = smov 128   ;;  %s4183_s20 = smov 8  }
  0x41   : > { %2714 = dma.hbm_to_vmem [thread:$0]  (!%p3515_p11), %s3525_s14, 256, %s3528_s18, %s3533_s27, %s4182_s7, %s4182_s7, %s4183_s20  }
  0x42   : > { %p390_p1 = scmp.lt.s32.totalorder %s3362_s11, 5  ;;  %p4220_p8 = scmp.ge.s32.totalorder %s3362_s11, 1 }
  0x43   : > { %s41_s19 = sadd.s32 1, %s3354_s9  ;;  %s103_s15 = sadd.s32 1, %s3330_s26 }
  0x44   : > { %p3567_p9 = pnand %p4220_p8, %p390_p1  ;;  %p42_p10 = scmp.ge.s32.totalorder %s41_s19, 2 }
  0x45   : > { %p110_p12 = scmp.ne.s32.totalorder %s3330_s26, %s3326_s25  ;;  %p116_p4 = scmp.ne.s32.totalorder %s3326_s25, %s3322_s24 }
  0x46   : > { %s4221_s23 = scalar_select %p3567_p9, 1, 0 }
  0x47   : > { %s3578_s13 = sand.u32 1, %s3330_s26   ;;  %s4282_s19 = smov (%p42_p10, %s41_s19), 0 }
  0x48   : > { %4222 = sst [smem:[#allocation29_spill]] %s4282_s19  ;;  %s4223_s14 = sadd.s32 1, %s3358_s10 }
  0x49   : > { %s4284_s14 = smov (!%p42_p10, %s4223_s14), %s3358_s10  ;;  %s100_s18 = ssub.s32 %s3354_s9, %s4282_s19 }
  0x4a   : > { %p4224_p13 = scmp.eq.s32.totalorder %s3362_s11, 0  ;;  %p46_p5 = scmp.ge.s32.totalorder %s4284_s14, 2 }
  0x4b   : > { %p101_p7 = scmp.eq.s32.totalorder %s100_s18, 0  ;;  %p4225_p3 = scmp.eq.s32.totalorder %s3478_s12, 0 }
  0x4c   : > { %p112_p2 = por %p110_p12, %p4224_p13  ;;  %s4286_s14 = smov (%p46_p5, %s4284_s14), 0 }
  0x4d   : > { %p3591_p1 = por %p116_p4, %p4225_p3  ;;  %4228 = sst [smem:[#allocation31_spill]] %s4286_s14 }
  0x4e   : > { %s3599_s7 = scalar_select %p101_p7, %s3330_s26, %s103_s15  }
  0x4f   : > { %s4226_s24 = scalar_select %p3591_p1, 1, 0 }
  0x50   : > { %4229 = sst [smem:[#allocation32_spill]] %s3599_s7  ;;  %s48_s20 = ssub.s32 %s3358_s10, %s4286_s14 }
  0x51   : > { %4227 = sst [smem:[#allocation30_spill]] %s4226_s24  ;;  %s4189_s1 = smul.u32 3072, %s3354_s9 }
  0x52   : > { %p49_p8 = scmp.eq.s32.totalorder %s48_s20, 0  ;;  %p4230_p10 = scmp.lt.s32.totalorder %s3362_s11, 4 }
  0x53   : > { %s4232_s18 = sadd.s32 1, %s3342_s29  ;;  %s4234_s3 = sld [smem:[#allocation35_spill]] }
  0x54   : > { %p3606_p0 = pnand %p4230_p10, %p112_p2  ;;  %s4235_s15 = smul.u32 192, %s3578_s13 }
  0x55   : > { %s3613_s8 = scalar_select %p49_p8, %s3342_s29, %s4232_s18  }
  0x56   : > { %s4231_s19 = scalar_select %p3606_p0, 1, 0 }
  0x57   : > { %4233 = sst [smem:[#allocation33_spill]] %s3613_s8  ;;  %s335_s20 = scalar_lea.vmem [#allocation9], %s4235_s15 }
  0x58   : > { %s342_s14 = sshll.u32 %s335_s20, 4  ;;  %s4236_s7 = sand.u32 1, %s3362_s11   ;;  %s3624_s14 = int_to_ptr.vmem [resolvable:$true] %s342_s14 }
  0x59   : > { %s3620_s30 = scalar_lea.hbm %s4234_s3, %s4189_s1  ;;  %s3628_s26 = scalar_lea.sflag [#allocation10], %s4236_s7 }
  0x5a   : > { %s3074_s18 = scalar_lea.hbm %s3620_s30, 3072  ;;  %p3634_p4 = pneg %p3606_p0 }
  0x5b   : > { %p3075_p12 = scmp.ne.s32.totalorder %s3620_s30, %s3074_s18  ;;  %s3079_s15 = scalar_lea.hbm %s4234_s3, 6144 }
  0x5c   : > { %p3080_p5 = scmp.lt.u32.totalorder %s3620_s30, %s4234_s3  ;;  %p3081_p7 = scmp.lt.u32.totalorder %s3079_s15, %s3074_s18 }
  0x5d   : > { %p3077_p13 = pnand %p3634_p4, %p3075_p12  ;;  %p3083_p8 = scmp.lt.u32.totalorder %s3074_s18, %s3620_s30 }
  0x5e   : > { %p3082_p3 = por %p3081_p7, %p3080_p5 }
  0x5f   : > { %p3078_p2 = pneg %p3077_p13 }
  0x60   : > { %p3084_p10 = por %p3083_p8, %p3082_p3 }
  0x62   : > { %p3085_p1 = pnand %p3084_p10, %p3078_p2 }
  0x64   : > { %3088 = shalt.err (!%p3085_p1)
}
  0x65   : > { %s3089_s7 = scalar_lea.vmem %s3624_s14, 3072  ;;  %s3367_s6 = smov [#allocation9]  }
  0x66   : > { %p3090_p12 = scmp.ne.s32.totalorder %s3624_s14, %s3089_s7  ;;  %s3094_s17 = sshll.u32 %s3367_s6, 4  ;;  %s3095_s17 = int_to_ptr.vmem [resolvable:$false] %s3094_s17 }
  0x67   : > { %s3096_s1 = scalar_lea.vmem %s3095_s17, 6144  ;;  %p3097_p9 = scmp.lt.s32.totalorder %s3624_s14, %s3095_s17 }
  0x68   : > { %p3092_p13 = pnand %p3090_p12, %p3634_p4  ;;  %p3098_p11 = scmp.lt.s32.totalorder %s3096_s1, %s3089_s7 }
  0x6a   : > { %p3093_p6 = pneg %p3092_p13  ;;  %p3099_p5 = por %p3098_p11, %p3097_p9 }
  0x6c   : > { %p3100_p7 = pnand %p3099_p5, %p3093_p6 }
  0x6e   : > { %3103 = shalt.err (!%p3100_p7)
}
  0x6f   : > { %s4201_s18 = smov 192   ;;  %s3369_s15 = smov 12  }
  0x70   : > { %2720 = dma.hbm_to_vmem [thread:$0]  (!%p3606_p0), %s3620_s30, 3072, %s3624_s14, %s3628_s26, %s4201_s18, %s4201_s18, %s3369_s15  }
  0x71   : > { %s4238_s20 = sshll.u32 %s3358_s10, 8  ;;  %s272_s1 = scalar_lea.vmem [#allocation3], %s3511_s21 }
  0x72   : > { %s3666_s17 = scalar_lea.hbm %s4162_s0, %s4238_s20  ;;  %s279_s3 = sshll.u32 %s272_s1, 4  ;;  %s3669_s3 = int_to_ptr.vmem [resolvable:$true] %s279_s3 }
  0x73   : > { %s4239_s11 = sand.u32 1, %s3342_s29   ;;  %s3104_s25 = scalar_lea.hbm %s3666_s17, 256 }
  0x74   : > { %s3673_s24 = scalar_lea.sflag [#allocation4], %s4239_s11  ;;  %p3105_p6 = scmp.ne.s32.totalorder %s3666_s17, %s3104_s25 }
  0x75   : > { %p4240_p11 = scmp.ne.s32.totalorder %s4218_s22, 0  ;;  %s3109_s20 = scalar_lea.hbm %s4162_s0, 512 }
  0x76   : > { %p3110_p3 = scmp.lt.u32.totalorder %s3666_s17, %s4162_s0  ;;  %p3111_p8 = scmp.lt.u32.totalorder %s3109_s20, %s3104_s25 }
  0x77   : > { %p4241_p9 = pneg %p4240_p11  ;;  %p3113_p12 = scmp.lt.u32.totalorder %s3104_s25, %s3666_s17 }
  0x78   : > { %p3112_p10 = por %p3111_p8, %p3110_p3 }
  0x79   : > { %p3107_p1 = pnand %p3105_p6, %p4241_p9 }
  0x7a   : > { %p3114_p13 = por %p3113_p12, %p3112_p10 }
  0x7b   : > { %p3108_p2 = pneg %p3107_p1 }
  0x7d   : > { %p3115_p5 = pnand %p3114_p13, %p3108_p2 }
  0x7f   : > { %3118 = shalt.err (!%p3115_p5)
}
  0x80   : > { %s3119_s11 = scalar_lea.vmem %s3669_s3, 256  ;;  %p4242_p6 = pmov %p4241_p9 }
  0x81   : > { %p3120_p7 = scmp.ne.s32.totalorder %s3669_s3, %s3119_s11  ;;  %s3370_s21 = smov [#allocation3]  }
  0x82   : > { %s3124_s1 = sshll.u32 %s3370_s21, 4  ;;  %s3125_s1 = int_to_ptr.vmem [resolvable:$false] %s3124_s1 }
  0x83   : > { %p3122_p9 = pnand %p3120_p7, %p4242_p6  ;;  %s3126_s30 = scalar_lea.vmem %s3125_s1, 512 }
  0x84   : > { %p3127_p0 = scmp.lt.s32.totalorder %s3669_s3, %s3125_s1  ;;  %p3128_p3 = scmp.lt.s32.totalorder %s3126_s30, %s3119_s11 }
  0x85   : > { %p3123_p1 = pneg %p3122_p9 }
  0x86   : > { %p3129_p8 = por %p3128_p3, %p3127_p0 }
  0x88   : > { %p3130_p10 = pnand %p3129_p8, %p3123_p1 }
  0x8a   : > { %3133 = shalt.err (!%p3130_p10)
}
  0x8b   : > { %s4243_s25 = smov 8   ;;  %s4244_s14 = smov 128  }
  0x8c   : > { %2711 = dma.hbm_to_vmem [thread:$0]  (!%p4240_p11), %s3666_s17, 256, %s3669_s3, %s3673_s24, %s4244_s14, %s4244_s14, %s4243_s25  }
  0x8d   : > { %s4245_s20 = smul.u32 3072, %s3354_s9  ;;  %s2424_s30 = sshll.u32 %s3578_s13, 7 }
  0x8e   : > { %s4246_s21 = smul.u32 192, %s3578_s13  ;;  %s3139_s17 = scalar_lea.hbm %s4164_s2, 6144 }
  0x8f   : > { %s3707_s11 = scalar_lea.hbm %s4164_s2, %s4245_s20 }
  0x90   : > { %s314_s22 = scalar_lea.vmem [#allocation8], %s4246_s21  ;;  %s3134_s18 = scalar_lea.hbm %s3707_s11, 3072 }
  0x91   : > { %s321_s1 = sshll.u32 %s314_s22, 4  ;;  %p3135_p0 = scmp.ne.s32.totalorder %s3707_s11, %s3134_s18  ;;  %s3711_s1 = int_to_ptr.vmem [resolvable:$true] %s321_s1 }
  0x92   : > { %p3140_p12 = scmp.lt.u32.totalorder %s3707_s11, %s4164_s2  ;;  %p3141_p13 = scmp.lt.u32.totalorder %s3139_s17, %s3134_s18 }
  0x93   : > { %p3137_p11 = pnand %p3135_p0, %p3634_p4  ;;  %p3143_p7 = scmp.lt.u32.totalorder %s3134_s18, %s3707_s11 }
  0x94   : > { %p3142_p5 = por %p3141_p13, %p3140_p12 }
  0x95   : > { %p3138_p2 = pneg %p3137_p11 }
  0x96   : > { %p3144_p6 = por %p3143_p7, %p3142_p5 }
  0x98   : > { %p3145_p9 = pnand %p3144_p6, %p3138_p2 }
  0x9a   : > { %3148 = shalt.err (!%p3145_p9)
}
  0x9b   : > { %s3149_s20 = scalar_lea.vmem %s3711_s1, 3072  ;;  %s3371_s7 = smov [#allocation8]  }
  0x9c   : > { %p3150_p1 = scmp.ne.s32.totalorder %s3711_s1, %s3149_s20  ;;  %s3154_s6 = sshll.u32 %s3371_s7, 4  ;;  %s3155_s6 = int_to_ptr.vmem [resolvable:$false] %s3154_s6 }
  0x9d   : > { %s3156_s21 = scalar_lea.vmem %s3155_s6, 6144  ;;  %p3157_p10 = scmp.lt.s32.totalorder %s3711_s1, %s3155_s6 }
  0x9e   : > { %p3152_p3 = pnand %p3150_p1, %p3634_p4  ;;  %p3158_p0 = scmp.lt.s32.totalorder %s3156_s21, %s3149_s20 }
  0xa0   : > { %p3153_p8 = pneg %p3152_p3  ;;  %p3159_p11 = por %p3158_p0, %p3157_p10 }
  0xa2   : > { %p3160_p12 = pnand %p3159_p11, %p3153_p8 }
  0xa4   : > { %3163 = shalt.err (!%p3160_p12)
}
  0xa5   : > { %p4247_p2 = scmp.ne.s32.totalorder %s4231_s19, 0  ;;  %s4248_s18 = smov 192  }
  0xa6   : > { %s2516_s22 = sshll.u32 %s3354_s9, 11  ;;  %s356_s25 = scalar_lea.vmem [#allocation11], %s2424_s30 }
  0xa7   : > { %2717 = dma.hbm_to_vmem [thread:$0]  (!%p4247_p2), %s3707_s11, 3072, %s3711_s1, %s3533_s27, %s4248_s18, %s4248_s18, %s3369_s15  }
  0xa8   : > { %s3743_s17 = scalar_lea.hbm %s4166_s4, %s2516_s22  ;;  %s363_s14 = sshll.u32 %s356_s25, 4  ;;  %s3747_s14 = int_to_ptr.vmem [resolvable:$true] %s363_s14 }
  0xa9   : > { %s3164_s20 = scalar_lea.hbm %s3743_s17, 2048  ;;  %s3169_s11 = scalar_lea.hbm %s4166_s4, 4096 }
  0xaa   : > { %p3165_p13 = scmp.ne.s32.totalorder %s3743_s17, %s3164_s20  ;;  %p3170_p6 = scmp.lt.u32.totalorder %s3743_s17, %s4166_s4 }
  0xab   : > { %p3171_p9 = scmp.lt.u32.totalorder %s3169_s11, %s3164_s20  ;;  %p3173_p3 = scmp.lt.u32.totalorder %s3164_s20, %s3743_s17 }
  0xac   : > { %p3167_p5 = pnand %p3165_p13, %p3634_p4 }
  0xad   : > { %p3172_p1 = por %p3171_p9, %p3170_p6 }
  0xae   : > { %p3168_p7 = pneg %p3167_p5 }
  0xaf   : > { %p3174_p8 = por %p3173_p3, %p3172_p1 }
  0xb1   : > { %p3175_p10 = pnand %p3174_p8, %p3168_p7 }
  0xb3   : > { %3178 = shalt.err (!%p3175_p10)
}
  0xb4   : > { %s3179_s30 = scalar_lea.vmem %s3747_s14, 2048  ;;  %s3372_s6 = smov [#allocation11]  }
  0xb5   : > { %p3180_p0 = scmp.ne.s32.totalorder %s3747_s14, %s3179_s30  ;;  %s3184_s21 = sshll.u32 %s3372_s6, 4  ;;  %s3185_s21 = int_to_ptr.vmem [resolvable:$false] %s3184_s21 }
  0xb6   : > { %s3186_s18 = scalar_lea.vmem %s3185_s21, 4096  ;;  %p3187_p13 = scmp.lt.s32.totalorder %s3747_s14, %s3185_s21 }
  0xb7   : > { %p3182_p11 = pnand %p3180_p0, %p3634_p4  ;;  %p3188_p5 = scmp.lt.s32.totalorder %s3186_s18, %s3179_s30 }
  0xb9   : > { %p3183_p12 = pneg %p3182_p11  ;;  %p3189_p6 = por %p3188_p5, %p3187_p13 }
  0xbb   : > { %p3190_p9 = pnand %p3189_p6, %p3183_p12 }
  0xbd   : > { %3193 = shalt.err (!%p3190_p9)
}
  0xbe   : > { %s3373_s22 = smov 64   ;;  %s3374_s3 = smov 4  }
  0xbf   : > { %2723 = dma.hbm_to_vmem [thread:$0]  (!%p4247_p2), %s3743_s17, 2048, %s3747_s14, %s3628_s26, %s3373_s22, %s3373_s22, %s3374_s3  }
  0xc0   : > { %s2690_s24 = smul.u32 24, %s3578_s13  ;;  %s374_s7 = scalar_lea.sflag [#allocation13], %s3578_s13 }
  0xc1   : > { %s2691_s25 = smul.u32 384, %s3354_s9  ;;  %s3199_s14 = scalar_lea.hbm %s4167_s5, 768 }
  0xc2   : > { %s377_s11 = scalar_lea.vmem [#allocation12], %s2690_s24 }
  0xc3   : > { %s3776_s15 = scalar_lea.hbm %s4167_s5, %s2691_s25  ;;  %s385_s1 = sshll.u32 %s377_s11, 4  ;;  %s386_s1 = int_to_ptr.vmem [resolvable:$true] %s385_s1 }
  0xc4   : > { %s3194_s30 = scalar_lea.hbm %s3776_s15, 384  ;;  %p3200_p8 = scmp.lt.u32.totalorder %s3776_s15, %s4167_s5 }
  0xc5   : > { %p3195_p7 = scmp.ne.s32.totalorder %s3776_s15, %s3194_s30  ;;  %p3201_p10 = scmp.lt.u32.totalorder %s3199_s14, %s3194_s30 }
  0xc6   : > { %p3203_p11 = scmp.lt.u32.totalorder %s3194_s30, %s3776_s15 }
  0xc7   : > { %p3197_p1 = pnand %p3195_p7, %p3634_p4  ;;  %p3202_p0 = por %p3201_p10, %p3200_p8 }
  0xc9   : > { %p3198_p3 = pneg %p3197_p1  ;;  %p3204_p12 = por %p3203_p11, %p3202_p0 }
  0xcb   : > { %p3205_p13 = pnand %p3204_p12, %p3198_p3 }
  0xcd   : > { %3208 = shalt.err (!%p3205_p13)
}
  0xce   : > { %s3209_s13 = scalar_lea.vmem %s386_s1, 384  ;;  %s3375_s18 = smov [#allocation12]  }
  0xcf   : > { %p3210_p5 = scmp.ne.s32.totalorder %s386_s1, %s3209_s13  ;;  %s3214_s22 = sshll.u32 %s3375_s18, 4  ;;  %s3215_s22 = int_to_ptr.vmem [resolvable:$false] %s3214_s22 }
  0xd0   : > { %s3216_s3 = scalar_lea.vmem %s3215_s22, 768  ;;  %p3217_p7 = scmp.lt.s32.totalorder %s386_s1, %s3215_s22 }
  0xd1   : > { %p3212_p6 = pnand %p3210_p5, %p3634_p4  ;;  %p3218_p1 = scmp.lt.s32.totalorder %s3216_s3, %s3209_s13 }
  0xd3   : > { %p3213_p9 = pneg %p3212_p6  ;;  %p3219_p2 = por %p3218_p1, %p3217_p7 }
  0xd5   : > { %p3220_p8 = pnand %p3219_p2, %p3213_p9 }
  0xd7   : > { %3223 = shalt.err (!%p3220_p8)
}
  0xd8   : > { %p4249_p10 = scmp.ne.s32.totalorder %s4231_s19, 0  ;;  %p4250_p3 = scmp.ne.s32.totalorder %s4221_s23, 0 }
  0xd9   : > { %s3799_s8 = sand.u32 (!%p4250_p3), 1, %s3338_s28   ;;  %p4251_p4 = scmp.ne.s32.totalorder (!%p4250_p3), %s4213_s16, 0 }
  0xda   : > { %2726 = dma.hbm_to_vmem [thread:$0]  (!%p4249_p10), %s3776_s15, 384, %s386_s1, %s374_s7  }
  0xdb   : > { %394 = sbr.rel (%p4250_p3) target bundleno = 3488 (0xda0), region = 48  ;;  %s3802_s24 = sshll.u32 (!%p4250_p3), %s3799_s8, 4 }
  0xdc   : > { %s397_s25 = scalar_lea.sflag (!%p4250_p3), [#allocation4], %s3799_s8  ;;  %s400_s20 = scalar_lea.vmem (!%p4250_p3), [#allocation3], %s3802_s24 }
  0xe2   : > { %3297 = dma.done.wait (%p4251_p4), %s397_s25, 256  }
  0xe3   : > { %3299 = vsyncadd (%p4251_p4), %s397_s25, 4294967040  ;;  %s405_s23 = sand.u32 1, %s3478_s12   ;;  %s409_s27 = scalar_lea.vmem [#allocation6], %s3802_s24 }
  0xe4   : > { %s406_s19 = scalar_lea.sflag [#allocation7], %s405_s23 }
  0xe5   : > { %3301 = dma.done.wait (%p4251_p4), %s406_s19, 256  }
  0xe6   : > { %3303 = vsyncadd (%p4251_p4), %s406_s19, 4294967040  ;;  %s4252_s15 = sld [smem:[#allocation21_spill]]  ;;  %s4253_s11 = sld [smem:[#allocation30_spill]] }
  0xec   : > { %s416_s1 = sand.u32 1, %s4252_s15   ;;  %p4254_p2 = scmp.ne.s32.totalorder %s4253_s11, 0 }
  0xed   : > { %s2692_s7 = smul.u32 192, %s416_s1 }
  0xef   : > { %s3817_s30 = scalar_lea.vmem [#allocation8], %s2692_s7 }
  0xf0   : > { %3305 = dma.done.wait (%p4254_p2), %s406_s19, 3072  }
  0xf1   : > { %3307 = vsyncadd (%p4254_p2), %s406_s19, 4294964224  ;;  %s424_s12 = scalar_lea.sflag [#allocation10], %s405_s23  ;;  %s3823_s26 = scalar_lea.vmem [#allocation9], %s2692_s7 }
  0xf2   : > { %3309 = dma.done.wait (%p4254_p2), %s424_s12, 5120  }
  0xf3   : > { %3311 = vsyncadd (%p4254_p2), %s424_s12, 4294962176  ;;  %s2431_s16 = sshll.u32 %s416_s1, 7  ;;  %s2693_s17 = smul.u32 24, %s416_s1 }
  0xf4   : > { %s3829_s14 = scalar_lea.vmem [#allocation11], %s2431_s16  ;;  %s442_s6 = scalar_lea.sflag [#allocation13], %s416_s1 }
  0xf5   : > { %s3831_s21 = scalar_lea.vmem [#allocation12], %s2693_s17 }
  0xf6   : > { %3313 = dma.done.wait (%p4254_p2), %s442_s6, 384  }
  0xf7   : > { %3315 = vsyncadd (%p4254_p2), %s442_s6, 4294966912  ;;  %s3838_s13 = scalar_lea.vmem [#allocation14], %s3802_s24  ;;  %s4255_s18 = sld [smem:[#allocation24_spill]] }
  0xfd   : > { %p2433_p0 = scmp.ne.s32.totalorder %s4255_s18, 0 }
  0xfe   : > { %v506_v0 = vld [vmem:[%s400_s20] sm:$0xff] (!%p2433_p0)  ;;  %v507_v1 = vld [vmem:[%s400_s20 + $0x8] sm:$0xff] (!%p2433_p0) }
  0xff   : > { %505 = sbr.rel (%p2433_p0) target bundleno = 262 (0x106), region = 76  ;;  %508 = vst [vmem:[#allocation2] sm:$0xff] (!%p2433_p0), %v506_v0  ;;  %509 = vst [vmem:[#allocation2 + $0x8] sm:$0xff] (!%p2433_p0), %v507_v1 }
 0x106 PF: > { %v2916_v2 = vld [vmem:[%s3817_s30 + $0x4] ss:$12 sps:$4 sm:$0xff]   ;;  %v2918_v3 = vld [vmem:[%s3817_s30] ss:$12 sps:$4 sm:$0xff]   ;;  %v3376_v4 = vmov 0   ;;  %v3858_v18 = vld [vmem:[#allocation2 + $0x8] sm:$0xff]  ;;  %v536_v29 = vlaneseq }
 0x107   : > { %656 = vmatprep.mubr.bf16.mxu0 %v3376_v4  ;;  %624 = vmatprep.subr.bf16.mxu0 %v2916_v2  ;;  %v2919_v5 = vld [vmem:[%s3817_s30 + $0x1c] ss:$12 sps:$4 sm:$0xff]   ;;  %v2921_v6 = vld [vmem:[%s3817_s30 + $0x18] ss:$12 sps:$4 sm:$0xff]   ;;  %v2922_v7 = vld [vmem:[%s3817_s30 + $0x34] ss:$12 sps:$4 sm:$0xff]  }
 0x108   : > { %625 = vmatpush1.bf16.msra.mxu0 %v2918_v3  ;;  %v2924_v8 = vld [vmem:[%s3817_s30 + $0x30] ss:$12 sps:$4 sm:$0xff]   ;;  %v2925_v9 = vld [vmem:[%s3817_s30 + $0x4c] ss:$12 sps:$4 sm:$0xff]   ;;  %v2927_v10 = vld [vmem:[%s3817_s30 + $0x48] ss:$12 sps:$4 sm:$0xff]  }
 0x109   : > { %626 = vmatprep.subr.bf16.mxu0 %v2919_v5  ;;  %v2928_v11 = vld [vmem:[%s3817_s30 + $0x64] ss:$12 sps:$4 sm:$0xff]   ;;  %v2930_v12 = vld [vmem:[%s3817_s30 + $0x60] ss:$12 sps:$4 sm:$0xff]   ;;  %v2931_v13 = vld [vmem:[%s3817_s30 + $0x7c] ss:$12 sps:$4 sm:$0xff]  }
 0x10a   : > { %v2933_v14 = vld [vmem:[%s3817_s30 + $0x78] ss:$12 sps:$4 sm:$0xff]   ;;  %v2934_v15 = vld [vmem:[%s3817_s30 + $0x94] ss:$12 sps:$4 sm:$0xff]   ;;  %v2936_v16 = vld [vmem:[%s3817_s30 + $0x90] ss:$12 sps:$4 sm:$0xff]  }
 0x10b   : > { %v3856_v17 = vld [vmem:[#allocation2] sm:$0xff]  ;;  %v513_v20 = vld [vmem:[%s409_s27 + $0x8] sm:$0xff]  ;;  %v3377_v27 = vmov 0.0   ;;  %v3874_v30 = vshrl.u32 %v536_v29, 7  ;;  %vm3378_vm0 = vmmov 0   ;;  %vm1013_vm1 = vcmask 261120  }
 0x10c   : > { %627 = vmatpush1.bf16.msra.mxu0 %v2921_v6  ;;  %v512_v19 = vld [vmem:[%s409_s27] sm:$0xff]  ;;  %v2937_v21 = vld [vmem:[%s3817_s30 + $0xac] ss:$12 sps:$4 sm:$0xff]   ;;  %v515_v24 = vadd.f32 %v513_v20, %v3858_v18  ;;  %2582 = vmatprep.subr.bf16.mxu1 %v3377_v27  ;;  %v667_v52 = vpack.c.bf16 %v3858_v18, %v3856_v17  ;;  %vm1190_vm2 = vcmask 130048   ;;  %s4256_s22 = sld [smem:[#allocation24_spill]] }
 0x10d   : > { %628 = vmatprep.subr.bf16.mxu0 %v2922_v7  ;;  %v2939_v22 = vld [vmem:[%s3817_s30 + $0xa8] ss:$12 sps:$4 sm:$0xff]   ;;  %v514_v23 = vadd.f32 %v512_v19, %v3856_v17  ;;  %v2941_v28 = vld [vmem:[%s3817_s30 + $0x20] ss:$12 sps:$4 sm:$0xff]   ;;  %v3877_v31 = vsub.s32 0, %v3874_v30  ;;  %2598 = vmatprep.mubr.msk.bf16.mxu1 %vm3378_vm0, %v3377_v27 }
 0x10e   : > { %v2940_v26 = vld [vmem:[%s3817_s30 + $0x8] ss:$12 sps:$4 sm:$0xff]   ;;  %v3880_v32 = vld [vmem:[%s3831_s21] sm:$0xff] }
 0x10f   : > { %v519_v25 = vpack.c.bf16 %v515_v24, %v514_v23  ;;  %2583 = vmatpush3.bf16.msra.mxu1 %v2940_v26  ;;  %v517_v33 = vld [vmem:[%s3831_s21 + $0x8] sm:$0xff]  ;;  %v539_v34 = vrot.slane %v3880_v32, %v3877_v31  ;;  %v2943_v47 = vld [vmem:[%s3817_s30 + $0x50] ss:$12 sps:$4 sm:$0xff]  }
 0x110   : > { %629 = vmatpush1.bf16.msra.mxu0 %v2924_v8  ;;  %2584 = vmatprep.subr.bf16.mxu1 %v3377_v27  ;;  %v543_v35 = vrot.slane %v517_v33, %v3877_v31  ;;  %v2942_v45 = vld [vmem:[%s3817_s30 + $0x38] ss:$12 sps:$4 sm:$0xff]   ;;  %v2944_v48 = vld [vmem:[%s3817_s30 + $0x68] ss:$12 sps:$4 sm:$0xff]   ;;  %v2945_v49 = vld [vmem:[%s3817_s30 + $0x80] ss:$12 sps:$4 sm:$0xff]  }
 0x111   : > { %630 = vmatprep.subr.bf16.mxu0 %v2925_v9  ;;  %v2946_v50 = vld [vmem:[%s3817_s30 + $0x98] ss:$12 sps:$4 sm:$0xff]   ;;  %v2947_v51 = vld [vmem:[%s3817_s30 + $0xb0] ss:$12 sps:$4 sm:$0xff]  }
 0x112   : > { %p2506_p11 = scmp.ne.s32.totalorder %s4256_s22, 1 }
 0x113   : > { %2585 = vmatpush3.bf16.msra.mxu1 %v2941_v28  ;;  %s4257_s25 = sld [smem:[#allocation36_spill]] (!%p2506_p11) }
 0x114   : > { %631 = vmatpush1.bf16.msra.mxu0 %v2927_v10  ;;  %2586 = vmatprep.subr.bf16.mxu1 %v3377_v27 }
 0x115   : > { %632 = vmatprep.subr.bf16.mxu0 %v2928_v11 }
 0x117   : > { %2587 = vmatpush3.bf16.msra.mxu1 %v2942_v45 }
 0x118   : > { %633 = vmatpush1.bf16.msra.mxu0 %v2930_v12  ;;  %2588 = vmatprep.subr.bf16.mxu1 %v3377_v27 }
 0x119   : > { %634 = vmatprep.subr.bf16.mxu0 %v2931_v13  ;;  %s4258_s20 = smov (!%p2506_p11), %s4257_s25 }
 0x11b   : > { %2589 = vmatpush3.bf16.msra.mxu1 %v2943_v47 }
 0x11c   : > { %635 = vmatpush1.bf16.msra.mxu0 %v2933_v14  ;;  %2590 = vmatprep.subr.bf16.mxu1 %v3377_v27 }
 0x11d   : > { %636 = vmatprep.subr.bf16.mxu0 %v2934_v15 }
 0x11f   : > { %2591 = vmatpush3.bf16.msra.mxu1 %v2944_v48 }
 0x120   : > { %637 = vmatpush1.bf16.msra.mxu0 %v2936_v16  ;;  %2592 = vmatprep.subr.bf16.mxu1 %v3377_v27 }
 0x121   : > { %638 = vmatprep.subr.bf16.mxu0 %v2937_v21 }
 0x123   : > { %2593 = vmatpush3.bf16.msra.mxu1 %v2945_v49 }
 0x124   : > { %639 = vmatpush1.bf16.msra.mxu0 %v2939_v22  ;;  %2594 = vmatprep.subr.bf16.mxu1 %v3377_v27 }
 0x125   : > { %2602 = vmatprep.subr.bf16.mxu0 %v3377_v27 }
 0x127   : > { %657 = vmatmul.mubr.bf16.vlgmr.msra.gmra.mrb[0].mxu0 %v519_v25  ;;  %2595 = vmatpush3.bf16.msra.mxu1 %v2946_v50 }
 0x128   : > { %2596 = vmatprep.subr.bf16.mxu1 %v3377_v27  ;;  %2606 = vmatprep.mubr.msk.bf16.mxu0 %vm3378_vm0, %v3377_v27 }
 0x12b   : > { %2597 = vmatpush3.bf16.msra.mxu1 %v2947_v51 }
 0x12c   : > { %2610 = vmatprep.subr.bf16.mxu1 %v3377_v27 }
 0x12e   : > { %2599 = vmatmul.mubr.bf16.vlgmr.msra.gmra.mrb[0].mxu1 %v667_v52 }
 0x12f   : > { %2614 = vmatprep.mubr.msk.bf16.mxu1 %vm3378_vm0, %v3377_v27 }
 0x1fa   : > { %v658_v36 = vpop.f32.mrb[0].mxu0 }
 0x1fb   : > { %v659_v37 = vadd.f32 %v658_v36, %v539_v34  ;;  %v660_v38 = vpop.f32.mrb[1].mxu0 }
 0x1fc   : > { %v661_v39 = vadd.f32 %v660_v38, %v543_v35  ;;  %v662_v40 = vpop.f32.mrb[2].mxu0 }
 0x1fd   : > { %v663_v41 = vadd.f32 %v662_v40, %v539_v34  ;;  %v664_v42 = vpop.f32.mrb[3].mxu0 }
 0x1fe   : > { %v665_v43 = vadd.f32 %v664_v42, %v543_v35  ;;  %v2832_v44 = vpack.i.bf16 %v661_v39, %v659_v37 }
 0x200   : > { %2833 = vxpose.xlu0.b32.start [1/2] (short) %v2832_v44, 128  ;;  %v2834_v46 = vpack.i.bf16 %v665_v43, %v663_v41 }
 0x204   : > { %2835 = vxpose.xlu0.b32.end [2/2] (short) %v2834_v46, 128 }
 0x280   : > { %v2836_v53 = vpop.trf.xlu0 }
 0x281   : > { %v2837_v54 = vunpack.i.l.bf16 %v2836_v53  ;;  %v2840_v55 = vunpack.i.h.bf16 %v2836_v53 }
 0x283   : > { %809 = vxpose.xlu1.b32.start [1/4] (short) (narrow) %v2837_v54, 16 }
 0x284   : > { %v2841_v56 = vpop.trf.xlu0 }
 0x285   : > { %v2845_v57 = vunpack.i.h.bf16 %v2841_v56  ;;  %v2842_v58 = vunpack.i.l.bf16 %v2841_v56 }
 0x287   : > { %810 = vxpose.xlu1.b32.cont [2/4] (short) (narrow) %v2842_v58, 16  ;;  %v1005_v59 = vpack.c.bf16 %v2845_v57, %v2840_v55 }
 0x288   : > { %v2846_v60 = vpop.trf.xlu0 }
 0x289   : > { %2603 = vmatpush3.bf16.msra.mxu0 %v1005_v59  ;;  %v2847_v61 = vunpack.i.l.bf16 %v2846_v60  ;;  %v2850_v62 = vunpack.i.h.bf16 %v2846_v60 }
 0x28a   : > { %2604 = vmatprep.subr.bf16.mxu0 %v3377_v27 }
 0x28b   : > { %811 = vxpose.xlu1.b32.cont [3/4] (short) (narrow) %v2847_v61, 16 }
 0x28c   : > { %v2851_v63 = vpop.trf.xlu0 }
 0x28d   : > { %v2855_v0 = vunpack.i.h.bf16 %v2851_v63  ;;  %v2852_v1 = vunpack.i.l.bf16 %v2851_v63 }
 0x28f   : > { %812 = vxpose.xlu1.b32.end [4/4] (short) (narrow) %v2852_v1, 16  ;;  %v1006_v2 = vpack.c.bf16 %v2855_v0, %v2850_v62  ;;  %v3926_v62 = vpop.f32.mrb[0].mxu1 }
 0x290   : > { %v2856_v3 = vpop.trf.xlu0  ;;  %v2600_v63 = vpop.f32.mrb[1].mxu1 }
 0x291   : > { %2605 = vmatpush3.bf16.msra.mxu0 %v1006_v2  ;;  %v2857_v5 = vunpack.i.l.bf16 %v2856_v3  ;;  %v2860_v6 = vunpack.i.h.bf16 %v2856_v3  ;;  %v3928_v0 = vpop.f32.mrb[2].mxu1 }
 0x292   : > { %2618 = vmatprep.subr.bf16.mxu0 %v3377_v27  ;;  %v2601_v1 = vpop.f32.mrb[3].mxu1 }
 0x293   : > { %841 = vxpose.xlu0.b32.start [1/4] (short) (narrow) %v2857_v5, 16 }
 0x294   : > { %v2861_v7 = vpop.trf.xlu0 }
 0x295   : > { %v2865_v8 = vunpack.i.h.bf16 %v2861_v7  ;;  %v2862_v9 = vunpack.i.l.bf16 %v2861_v7 }
 0x297   : > { %842 = vxpose.xlu0.b32.cont [2/4] (short) (narrow) %v2862_v9, 16  ;;  %v1007_v10 = vpack.c.bf16 %v2865_v8, %v2860_v6 }
 0x298   : > { %v2866_v11 = vpop.trf.xlu0 }
 0x299   : > { %2611 = vmatpush3.bf16.msra.mxu1 %v1007_v10  ;;  %v2867_v12 = vunpack.i.l.bf16 %v2866_v11  ;;  %v2870_v13 = vunpack.i.h.bf16 %v2866_v11 }
 0x29a   : > { %2612 = vmatprep.subr.bf16.mxu1 %v3377_v27 }
 0x29b   : > { %843 = vxpose.xlu0.b32.cont [3/4] (short) (narrow) %v2867_v12, 16 }
 0x29c   : > { %v2871_v14 = vpop.trf.xlu0 }
 0x29d   : > { %v2875_v15 = vunpack.i.h.bf16 %v2871_v14  ;;  %v2872_v16 = vunpack.i.l.bf16 %v2871_v14 }
 0x29f   : > { %844 = vxpose.xlu0.b32.end [4/4] (short) (narrow) %v2872_v16, 16  ;;  %v1008_v17 = vpack.c.bf16 %v2875_v15, %v2870_v13 }
 0x2a0   : > { %v2876_v18 = vpop.trf.xlu0 }
 0x2a1   : > { %2613 = vmatpush3.bf16.msra.mxu1 %v1008_v17  ;;  %v2877_v19 = vunpack.i.l.bf16 %v2876_v18  ;;  %v2880_v20 = vunpack.i.h.bf16 %v2876_v18 }
 0x2a2   : > { %2626 = vmatprep.subr.bf16.mxu1 %v3377_v27 }
 0x2a3   : > { %873 = vxpose.xlu1.b32.start [1/4] (short) (narrow) %v2877_v19, 16 }
 0x2a4   : > { %v2881_v21 = vpop.trf.xlu0 }
 0x2a5   : > { %v2885_v22 = vunpack.i.h.bf16 %v2881_v21  ;;  %v2882_v23 = vunpack.i.l.bf16 %v2881_v21 }
 0x2a7   : > { %874 = vxpose.xlu1.b32.cont [2/4] (short) (narrow) %v2882_v23, 16  ;;  %v1009_v24 = vpack.c.bf16 %v2885_v22, %v2880_v20 }
 0x2a8   : > { %v2886_v25 = vpop.trf.xlu0 }
 0x2a9   : > { %v2887_v26 = vunpack.i.l.bf16 %v2886_v25  ;;  %v2890_v28 = vunpack.i.h.bf16 %v2886_v25 }
 0x2ab   : > { %875 = vxpose.xlu1.b32.cont [3/4] (short) (narrow) %v2887_v26, 16 }
 0x2ac   : > { %v2891_v29 = vpop.trf.xlu0 }
 0x2ad   : > { %v2895_v33 = vunpack.i.h.bf16 %v2891_v29  ;;  %v2892_v34 = vunpack.i.l.bf16 %v2891_v29 }
 0x2af   : > { %876 = vxpose.xlu1.b32.end [4/4] (short) (narrow) %v2892_v34, 16  ;;  %v1010_v35 = vpack.c.bf16 %v2895_v33, %v2890_v28 }
 0x2b0   : > { %v2896_v36 = vpop.trf.xlu0 }
 0x2b1   : > { %v2897_v37 = vunpack.i.l.bf16 %v2896_v36  ;;  %v2900_v38 = vunpack.i.h.bf16 %v2896_v36 }
 0x2b3   : > { %905 = vxpose.xlu1.b32.start [1/4] (short) (narrow) %v2897_v37, 16 }
 0x2b4   : > { %v2901_v39 = vpop.trf.xlu0 }
 0x2b5   : > { %v2905_v40 = vunpack.i.h.bf16 %v2901_v39  ;;  %v2902_v41 = vunpack.i.l.bf16 %v2901_v39 }
 0x2b7   : > { %906 = vxpose.xlu1.b32.cont [2/4] (short) (narrow) %v2902_v41, 16  ;;  %v1011_v42 = vpack.c.bf16 %v2905_v40, %v2900_v38 }
 0x2b8   : > { %v2906_v43 = vpop.trf.xlu0 }
 0x2b9   : > { %v2907_v44 = vunpack.i.l.bf16 %v2906_v43  ;;  %v2910_v53 = vunpack.i.h.bf16 %v2906_v43 }
 0x2bb   : > { %907 = vxpose.xlu1.b32.cont [3/4] (short) (narrow) %v2907_v44, 16 }
 0x2bc   : > { %v2911_v45 = vpop.trf.xlu0 }
 0x2bd   : > { %v2912_v46 = vunpack.i.l.bf16 %v2911_v45  ;;  %v2915_v54 = vunpack.i.h.bf16 %v2911_v45 }
 0x2bf   : > { %908 = vxpose.xlu1.b32.end [4/4] (short) (narrow) %v2912_v46, 16  ;;  %v1012_v55 = vpack.c.bf16 %v2915_v54, %v2910_v53 }
 0x303   : > { %v825_v47 = vpop.trf.xlu1 }
 0x307   : > { %v826_v48 = vpop.trf.xlu1 }
 0x308   : > { %v1001_v49 = vpack.c.bf16 %v826_v48, %v825_v47 }
 0x30a   : > { %2607 = vmatmul.mubr.msk.bf16.vlgmr.msra.gmra.mrb[4].mxu0 %vm1013_vm1, %v1001_v49 }
 0x30b   : > { %2619 = vmatpush3.bf16.msra.mxu0 %v1009_v24  ;;  %2622 = vmatprep.mubr.msk.bf16.mxu0 %vm3378_vm0, %v3377_v27 }
 0x30c   : > { %2620 = vmatprep.subr.bf16.mxu0 %v3377_v27 }
 0x30f   : > { %2621 = vmatpush3.bf16.msra.mxu0 %v1010_v35 }
 0x310   : > { %2650 = vmatprep.subr.bf16.mxu0 %v3377_v27 }
 0x313   : > { %v857_v50 = vpop.trf.xlu0 }
 0x317   : > { %v858_v51 = vpop.trf.xlu0 }
 0x318   : > { %v1002_v52 = vpack.c.bf16 %v858_v51, %v857_v50 }
 0x31a   : > { %2615 = vmatmul.mubr.msk.bf16.vlgmr.msra.gmra.mrb[4].mxu1 %vm1013_vm1, %v1002_v52 }
 0x31b   : > { %2627 = vmatpush3.bf16.msra.mxu1 %v1011_v42  ;;  %2630 = vmatprep.mubr.msk.bf16.mxu1 %vm3378_vm0, %v3377_v27 }
 0x31c   : > { %2628 = vmatprep.subr.bf16.mxu1 %v3377_v27 }
 0x31f   : > { %2629 = vmatpush3.bf16.msra.mxu1 %v1012_v55 }
 0x320   : > { %2634 = vmatprep.subr.bf16.mxu1 %v3377_v27 }
 0x323   : > { %v889_v56 = vpop.trf.xlu1 }
 0x327   : > { %v890_v57 = vpop.trf.xlu1 }
 0x328   : > { %v1003_v58 = vpack.c.bf16 %v890_v57, %v889_v56 }
 0x32a   : > { %2623 = vmatmul.mubr.msk.bf16.vlgmr.msra.gmra.mrb[8].mxu0 %vm1013_vm1, %v1003_v58 }
 0x32b   : > { %2654 = vmatprep.mubr.msk.bf16.mxu0 %vm3378_vm0, %v3377_v27 }
 0x333   : > { %v921_v59 = vpop.trf.xlu1 }
 0x337   : > { %v922_v60 = vpop.trf.xlu1 }
 0x338   : > { %v1004_v61 = vpack.c.bf16 %v922_v60, %v921_v59 }
 0x33a   : > { %2631 = vmatmul.mubr.msk.bf16.vlgmr.msra.gmra.mrb[8].mxu1 %vm1013_vm1, %v1004_v61 }
 0x33b   : > { %2638 = vmatprep.mubr.msk.bf16.mxu1 %vm3378_vm0, %v3377_v27 }
 0x3dd   : > { %v1051_v2 = vpop.f32.mrb[4].mxu0 }
 0x3de   : > { %v2608_v3 = vpop.f32.mrb[5].mxu0  ;;  %v1191_v5 = vsel %vm1190_vm2, %v1051_v2, -inf }
 0x3df   : > { %1192 = vmax.xlane.f32.xlu1 %v1191_v5  ;;  %v1054_v6 = vpop.f32.mrb[6].mxu0 }
 0x3e0   : > { %v1194_v7 = vsel %vm1190_vm2, %v1054_v6, -inf  ;;  %v2609_v8 = vpop.f32.mrb[7].mxu0 }
 0x3e1   : > { %1195 = vmax.xlane.f32.xlu0 %v1194_v7 }
 0x3ed   : > { %v1095_v9 = vpop.f32.mrb[4].mxu1 }
 0x3ee   : > { %v2616_v10 = vpop.f32.mrb[5].mxu1  ;;  %v1197_v11 = vsel %vm1190_vm2, %v1095_v9, -inf }
 0x3ef   : > { %1198 = vmax.xlane.f32.xlu1 %v1197_v11  ;;  %v1098_v12 = vpop.f32.mrb[6].mxu1  ;;  %v518_v10 = vld [vmem:[%s3831_s21 + $0x10] sm:$0xff] }
 0x3f0   : > { %v2617_v13 = vpop.f32.mrb[7].mxu1  ;;  %v1200_v14 = vsel %vm1190_vm2, %v1098_v12, -inf  ;;  %v687_v11 = vrot.slane %v518_v10, %v3877_v31 }
 0x3f2   : > { %v774_v13 = vadd.f32 %v3928_v0, %v687_v11 }
 0x3f3   : > { %1201 = vmax.xlane.f32.xlu1 %v1200_v14 }
 0x3fd   : > { %v1139_v15 = vpop.f32.mrb[8].mxu0 }
 0x3fe   : > { %v2624_v16 = vpop.f32.mrb[9].mxu0  ;;  %v1203_v17 = vsel %vm1190_vm2, %v1139_v15, -inf }
 0x3ff   : > { %1204 = vmax.xlane.f32.xlu1 %v1203_v17  ;;  %v1142_v18 = vpop.f32.mrb[10].mxu0 }
 0x400   : > { %v2625_v19 = vpop.f32.mrb[11].mxu0  ;;  %v1206_v20 = vsel %vm1190_vm2, %v1142_v18, -inf }
 0x403   : > { %1207 = vmax.xlane.f32.xlu1 %v1206_v20 }
 0x40d   : > { %v1183_v21 = vpop.f32.mrb[8].mxu1 }
 0x40e   : > { %v1209_v22 = vsel %vm1190_vm2, %v1183_v21, -inf  ;;  %v2632_v23 = vpop.f32.mrb[9].mxu1 }
 0x40f   : > { %1210 = vmax.xlane.f32.xlu1 %v1209_v22  ;;  %v1186_v24 = vpop.f32.mrb[10].mxu1 }
 0x410   : > { %v1212_v25 = vsel %vm1190_vm2, %v1186_v24, -inf  ;;  %v2633_v26 = vpop.f32.mrb[11].mxu1 }
 0x413   : > { %1213 = vmax.xlane.f32.xlu1 %v1212_v25 }
 0x46c   : > { %v1193_v28 = vpop.xlane.xlu1 %1192 }
 0x46d   : > { %v1215_v29 = vsub.f32 %v1051_v2, %v1193_v28 }
 0x46e   : > { %v1196_v33 = vpop.xlane.xlu0 %1195 }
 0x46f   : > { %v1223_v34 = vmul.f32 1.442695, %v1215_v29  ;;  %v1216_v35 = vsub.f32 %v1054_v6, %v1196_v33 }
 0x471   : > { %2996 = vpow2.f32 %v1223_v34  ;;  %v1225_v36 = vmul.f32 1.442695, %v1216_v35 }
 0x473   : > { %2998 = vpow2.f32 %v1225_v36 }
 0x47b   : > { %v3938_v37 = vpop.eup %2996 }
 0x47c   : > { %v1199_v38 = vpop.xlane.xlu1 %1198  ;;  %v1239_v39 = vsel %vm1190_vm2, %v3938_v37, 0.0 }
 0x47d   : > { %v3942_v40 = vpop.eup %2998  ;;  %v1217_v41 = vsub.f32 %v1095_v9, %v1199_v38  ;;  %1240 = vadd.xlane.f32.xlu1 %v1239_v39 }
 0x47e   : > { %v1242_v44 = vsel %vm1190_vm2, %v3942_v40, 0.0 }
 0x47f   : > { %v1227_v42 = vmul.f32 1.442695, %v1217_v41 }
 0x480   : > { %v1202_v43 = vpop.xlane.xlu1 %1201 }
 0x481   : > { %3000 = vpow2.f32 %v1227_v42  ;;  %v1218_v45 = vsub.f32 %v1098_v12, %v1202_v43  ;;  %1243 = vadd.xlane.f32.xlu1 %v1242_v44  ;;  %v771_v12 = vadd.f32 %v3926_v62, %v687_v11 }
 0x483   : > { %v1229_v46 = vmul.f32 1.442695, %v1218_v45 }
 0x485   : > { %3002 = vpow2.f32 %v1229_v46 }
 0x48b   : > { %v3946_v47 = vpop.eup %3000 }
 0x48c   : > { %v1205_v48 = vpop.xlane.xlu1 %1204  ;;  %v1245_v49 = vsel %vm1190_vm2, %v3946_v47, 0.0 }
 0x48d   : > { %v1219_v50 = vsub.f32 %v1139_v15, %v1205_v48  ;;  %1246 = vadd.xlane.f32.xlu1 %v1245_v49 }
 0x48f   : > { %v3950_v51 = vpop.eup %3002  ;;  %v1231_v52 = vmul.f32 1.442695, %v1219_v50 }
 0x490   : > { %v1208_v53 = vpop.xlane.xlu1 %1207  ;;  %v1248_v54 = vsel %vm1190_vm2, %v3950_v51, 0.0 }
 0x491   : > { %3004 = vpow2.f32 %v1231_v52  ;;  %v1220_v55 = vsub.f32 %v1142_v18, %v1208_v53  ;;  %1249 = vadd.xlane.f32.xlu0 %v1248_v54 }
 0x493   : > { %v1233_v56 = vmul.f32 1.442695, %v1220_v55 }
 0x495   : > { %3006 = vpow2.f32 %v1233_v56 }
 0x49b   : > { %v3954_v57 = vpop.eup %3004 }
 0x49c   : > { %v1211_v58 = vpop.xlane.xlu1 %1210  ;;  %v1251_v59 = vsel %vm1190_vm2, %v3954_v57, 0.0 }
 0x49d   : > { %v1221_v60 = vsub.f32 %v1183_v21, %v1211_v58  ;;  %1252 = vadd.xlane.f32.xlu1 %v1251_v59 }
 0x49f   : > { %v3958_v61 = vpop.eup %3006  ;;  %v1235_v63 = vmul.f32 1.442695, %v1221_v60 }
 0x4a0   : > { %v1214_v1 = vpop.xlane.xlu1 %1213  ;;  %v1254_v2 = vsel %vm1190_vm2, %v3958_v61, 0.0 }
 0x4a1   : > { %3008 = vpow2.f32 %v1235_v63  ;;  %v1222_v3 = vsub.f32 %v1186_v24, %v1214_v1  ;;  %1255 = vadd.xlane.f32.xlu0 %v1254_v2 }
 0x4a3   : > { %v1237_v5 = vmul.f32 1.442695, %v1222_v3 }
 0x4a5   : > { %3010 = vpow2.f32 %v1237_v5 }
 0x4ab   : > { %v3962_v6 = vpop.eup %3008 }
 0x4ac   : > { %v1257_v7 = vsel %vm1190_vm2, %v3962_v6, 0.0 }
 0x4ad   : > { %1258 = vadd.xlane.f32.xlu0 %v1257_v7 }
 0x4af   : > { %v3966_v8 = vpop.eup %3010 }
 0x4b0   : > { %v1260_v9 = vsel %vm1190_vm2, %v3966_v8, 0.0 }
 0x4b1   : > { %1261 = vadd.xlane.f32.xlu0 %v1260_v9 }
 0x4d0   : > { %969 = vxpose.xlu1.b32.start [1/2] (short) %v771_v12, 128 }
 0x4d4   : > { %970 = vxpose.xlu1.b32.end [2/2] (short) %v774_v13, 128 }
 0x50a   : > { %v1241_v14 = vpop.xlane.xlu1 %1240 }
 0x50e   : > { %v1244_v15 = vpop.xlane.xlu1 %1243 }
 0x50f   : > { %3012 = vrcp.f32 %v1244_v15 }
 0x510   : > { %3014 = vrcp.f32 %v1241_v14 }
 0x519   : > { %v3013_v23 = vpop.eup %3012 }
 0x51a   : > { %v1247_v16 = vpop.xlane.xlu1 %1246  ;;  %v3015_v24 = vpop.eup %3014  ;;  %v1272_v26 = vmul.f32 %v3013_v23, %v3942_v40 }
 0x51b   : > { %v1271_v29 = vmul.f32 %v3015_v24, %v3938_v37 }
 0x51d   : > { %v1279_v35 = vpack.c.bf16 %v1272_v26, %v1271_v29  ;;  %v2948_v26 = vld [vmem:[%s3823_s26] ss:$12 sps:$4 sm:$0xff]   ;;  %v2950_v29 = vld [vmem:[%s3823_s26 + $0x30] ss:$12 sps:$4 sm:$0xff]  }
 0x51e   : > { %v1250_v28 = vpop.xlane.xlu0 %1249 }
 0x51f   : > { %3016 = vrcp.f32 %v1250_v28  ;;  %v2949_v28 = vld [vmem:[%s3823_s26 + $0x18] ss:$12 sps:$4 sm:$0xff]  }
 0x520   : > { %3018 = vrcp.f32 %v1247_v16 }
 0x529   : > { %v3017_v41 = vpop.eup %3016 }
 0x52a   : > { %v1253_v17 = vpop.xlane.xlu1 %1252  ;;  %v3019_v42 = vpop.eup %3018  ;;  %v1274_v44 = vmul.f32 %v3017_v41, %v3950_v51 }
 0x52b   : > { %v1273_v46 = vmul.f32 %v3019_v42, %v3946_v47 }
 0x52d   : > { %v1280_v50 = vpack.c.bf16 %v1274_v44, %v1273_v46 }
 0x52e   : > { %v1256_v45 = vpop.xlane.xlu0 %1255 }
 0x52f   : > { %3020 = vrcp.f32 %v1256_v45 }
 0x530   : > { %3022 = vrcp.f32 %v1253_v17 }
 0x539   : > { %v3021_v47 = vpop.eup %3020 }
 0x53a   : > { %v1259_v51 = vpop.xlane.xlu0 %1258  ;;  %v3023_v58 = vpop.eup %3022  ;;  %v1276_v60 = vmul.f32 %v3021_v47, %v3958_v61 }
 0x53b   : > { %v1275_v1 = vmul.f32 %v3023_v58, %v3954_v57 }
 0x53d   : > { %v1281_v5 = vpack.c.bf16 %v1276_v60, %v1275_v1 }
 0x53e   : > { %v1262_v63 = vpop.xlane.xlu0 %1261 }
 0x53f   : > { %3024 = vrcp.f32 %v1262_v63 }
 0x540   : > { %3026 = vrcp.f32 %v1259_v51 }
 0x549   : > { %v3025_v11 = vpop.eup %3024 }
 0x54a   : > { %v3027_v12 = vpop.eup %3026  ;;  %v1278_v13 = vmul.f32 %v3025_v11, %v3966_v8  ;;  %v2958_v11 = vld [vmem:[%s3823_s26 + $0x8] ss:$12 sps:$4 sm:$0xff]  }
 0x54b   : > { %v1277_v14 = vmul.f32 %v3027_v12, %v3962_v6 }
 0x54d   : > { %v1282_v15 = vpack.c.bf16 %v1278_v13, %v1277_v14 }
 0x550   : > { %v985_v18 = vpop.trf.xlu1 }
 0x554   : > { %v986_v19 = vpop.trf.xlu1 }
 0x555   : > { %v1283_v20 = vpack.c.bf16 %v986_v19, %v985_v18 }
 0x557   : > { %v1295_v21 = vsel %vm1190_vm2, %v1283_v20, 0 }
 0x558   : > { %2635 = vmatpush3.bf16.xpose.msra.mxu1 %v1295_v21  ;;  %v987_v22 = vpop.trf.xlu1 }
 0x559   : > { %2636 = vmatprep.subr.bf16.mxu1 %v3377_v27 }
 0x55c   : > { %v988_v31 = vpop.trf.xlu1 }
 0x55d   : > { %v1284_v62 = vpack.c.bf16 %v988_v31, %v987_v22 }
 0x55f   : > { %v1298_v0 = vsel %vm1190_vm2, %v1284_v62, 0 }
 0x560   : > { %2637 = vmatpush3.bf16.xpose.msra.mxu1 %v1298_v0  ;;  %v989_v25 = vpop.trf.xlu1 }
 0x561   : > { %2642 = vmatprep.subr.bf16.mxu1 %v3377_v27 }
 0x564   : > { %v990_v33 = vpop.trf.xlu1 }
 0x565   : > { %v1285_v34 = vpack.c.bf16 %v990_v33, %v989_v25  ;;  %v2951_v33 = vld [vmem:[%s3823_s26 + $0x48] ss:$12 sps:$4 sm:$0xff]  }
 0x567   : > { %v1345_v36 = vsel %vm1190_vm2, %v1285_v34, 0  ;;  %2639 = vmatmul.mubr.msk.bf16.vlgmr.msra.gmra.mrb[12].mxu1 %vm1190_vm2, %v1279_v35  ;;  %v2952_v34 = vld [vmem:[%s3823_s26 + $0x60] ss:$12 sps:$4 sm:$0xff]   ;;  %v2953_v35 = vld [vmem:[%s3823_s26 + $0x78] ss:$12 sps:$4 sm:$0xff]  }
 0x568   : > { %2643 = vmatpush3.bf16.xpose.msra.mxu1 %v1345_v36  ;;  %v991_v38 = vpop.trf.xlu1  ;;  %2646 = vmatprep.mubr.msk.bf16.mxu1 %vm3378_vm0, %v3377_v27  ;;  %v2954_v36 = vld [vmem:[%s3823_s26 + $0x90] ss:$12 sps:$4 sm:$0xff]  }
 0x569   : > { %2644 = vmatprep.subr.bf16.mxu1 %v3377_v27 }
 0x56c   : > { %v992_v39 = vpop.trf.xlu1 }
 0x56d   : > { %v1286_v40 = vpack.c.bf16 %v992_v39, %v991_v38  ;;  %v2955_v39 = vld [vmem:[%s3823_s26 + $0xa8] ss:$12 sps:$4 sm:$0xff]  }
 0x56f   : > { %v1348_v37 = vsel %vm1190_vm2, %v1286_v40, 0 }
 0x570   : > { %2645 = vmatpush3.bf16.xpose.msra.mxu1 %v1348_v37  ;;  %v993_v43 = vpop.trf.xlu1 }
 0x571   : > { %2658 = vmatprep.subr.bf16.mxu1 %v3377_v27 }
 0x574   : > { %v994_v48 = vpop.trf.xlu1 }
 0x575   : > { %v1287_v49 = vpack.c.bf16 %v994_v48, %v993_v43 }
 0x577   : > { %v1395_v52 = vsel %vm1190_vm2, %v1287_v49, 0  ;;  %2647 = vmatmul.mubr.msk.bf16.vlgmr.msra.gmra.mrb[16].mxu1 %vm1190_vm2, %v1280_v50 }
 0x578   : > { %2651 = vmatpush3.bf16.xpose.msra.mxu0 %v1395_v52  ;;  %v995_v53 = vpop.trf.xlu1  ;;  %2662 = vmatprep.mubr.msk.bf16.mxu1 %vm3378_vm0, %v3377_v27 }
 0x579   : > { %2652 = vmatprep.subr.bf16.mxu0 %v3377_v27 }
 0x57c   : > { %v996_v54 = vpop.trf.xlu1 }
 0x57d   : > { %v1288_v55 = vpack.c.bf16 %v996_v54, %v995_v53 }
 0x57f   : > { %v1398_v56 = vsel %vm1190_vm2, %v1288_v55, 0 }
 0x580   : > { %2653 = vmatpush3.bf16.xpose.msra.mxu0 %v1398_v56  ;;  %v997_v59 = vpop.trf.xlu1  ;;  %v1670_v56 = vsub.s32 1, %v3874_v30 }
 0x581   : > { %2666 = vmatprep.subr.bf16.mxu0 %v3377_v27 }
 0x582   : > { %v1671_v58 = vrot.slane %v3880_v32, %v1670_v56  ;;  %v2959_v32 = vld [vmem:[%s3823_s26 + $0x1c] ss:$12 sps:$4 sm:$0xff]  }
 0x584   : > { %v998_v2 = vpop.trf.xlu1 }
 0x585   : > { %v1289_v3 = vpack.c.bf16 %v998_v2, %v997_v59 }
 0x587   : > { %v1445_v7 = vsel %vm1190_vm2, %v1289_v3, 0  ;;  %2655 = vmatmul.mubr.msk.bf16.vlgmr.msra.gmra.mrb[12].mxu0 %vm1190_vm2, %v1281_v5  ;;  %v3036_v5 = vld [vmem:[#allocation2] sm:$0xff] }
 0x588   : > { %2659 = vmatpush3.bf16.xpose.msra.mxu1 %v1445_v7  ;;  %v999_v9 = vpop.trf.xlu1  ;;  %2682 = vmatprep.mubr.msk.bf16.mxu0 %vm3378_vm0, %v3377_v27 }
 0x589   : > { %2660 = vmatprep.subr.bf16.mxu1 %v3377_v27  ;;  %2667 = vmatpush3.bf16.msra.mxu0 %v2948_v26  ;;  %v2980_v26 = vld [vmem:[%s3829_s14 + $0x40] sm:$0xff]  }
 0x58a   : > { %2668 = vmatprep.subr.bf16.mxu0 %v3377_v27 }
 0x58c   : > { %v1000_v61 = vpop.trf.xlu1 }
 0x58d   : > { %v1290_v10 = vpack.c.bf16 %v1000_v61, %v999_v9  ;;  %2669 = vmatpush3.bf16.msra.mxu0 %v2949_v28  ;;  %v3037_v9 = vld [vmem:[#allocation2 + $0x8] sm:$0xff]  ;;  %v2981_v28 = vld [vmem:[%s3829_s14] sm:$0xff]  }
 0x58e   : > { %2670 = vmatprep.subr.bf16.mxu0 %v3377_v27 }
 0x58f   : > { %v1448_v57 = vsel %vm1190_vm2, %v1290_v10, 0  ;;  %v2956_v10 = vld [vmem:[%s3823_s26 + $0x4] ss:$12 sps:$4 sm:$0xff]  }
 0x590   : > { %2661 = vmatpush3.bf16.xpose.msra.mxu1 %v1448_v57  ;;  %v2961_v57 = vld [vmem:[%s3823_s26 + $0x20] ss:$12 sps:$4 sm:$0xff]  }
 0x591   : > { %2671 = vmatpush3.bf16.msra.mxu0 %v2950_v29  ;;  %1903 = vmatprep.subr.bf16.mxu1 %v2958_v11  ;;  %v2982_v29 = vld [vmem:[%s3829_s14 + $0x48] sm:$0xff]  }
 0x592   : > { %2672 = vmatprep.subr.bf16.mxu0 %v3377_v27 }
 0x595   : > { %2673 = vmatpush3.bf16.msra.mxu0 %v2951_v33  ;;  %v2983_v33 = vld [vmem:[%s3829_s14 + $0x8] sm:$0xff]  }
 0x596   : > { %2674 = vmatprep.subr.bf16.mxu0 %v3377_v27 }
 0x597   : > { %2663 = vmatmul.mubr.msk.bf16.vlgmr.msra.gmra.mrb[20].mxu1 %vm1190_vm2, %v1282_v15 }
 0x598   : > { %1935 = vmatprep.mubr.bf16.mxu1 %v3376_v4  ;;  %1904 = vmatpush1.bf16.msra.mxu1 %v2956_v10 }
 0x599   : > { %2675 = vmatpush3.bf16.msra.mxu0 %v2952_v34  ;;  %1905 = vmatprep.subr.bf16.mxu1 %v2961_v57  ;;  %v2984_v34 = vld [vmem:[%s3829_s14 + $0x50] sm:$0xff]  }
 0x59a   : > { %2676 = vmatprep.subr.bf16.mxu0 %v3377_v27 }
 0x59c   : > { %1906 = vmatpush1.bf16.msra.mxu1 %v2959_v32 }
 0x59d   : > { %2677 = vmatpush3.bf16.msra.mxu0 %v2953_v35  ;;  %v2985_v35 = vld [vmem:[%s3829_s14 + $0x10] sm:$0xff]  }
 0x59e   : > { %2678 = vmatprep.subr.bf16.mxu0 %v3377_v27 }
 0x5a1   : > { %2679 = vmatpush3.bf16.msra.mxu0 %v2954_v36  ;;  %v2986_v36 = vld [vmem:[%s3829_s14 + $0x58] sm:$0xff]  }
 0x5a2   : > { %2680 = vmatprep.subr.bf16.mxu0 %v3377_v27 }
 0x5a5   : > { %2681 = vmatpush3.bf16.msra.mxu0 %v2955_v39  ;;  %v2988_v39 = vld [vmem:[%s3829_s14 + $0x60] sm:$0xff]  }
 0x5a6   : > { %2560 = vmatprep.subr.bf16.mxu0 %v2980_v26 }
 0x63a   : > { %v1334_v16 = vpop.f32.mrb[12].mxu1 }
 0x63b   : > { %1491 = vxpose.xlu0.b32.start [1/2] (short) (narrow) %v1334_v16, 32  ;;  %v2640_v17 = vpop.f32.mrb[13].mxu1 }
 0x63c   : > { %v1337_v18 = vpop.f32.mrb[14].mxu1 }
 0x63d   : > { %v2641_v19 = vpop.f32.mrb[15].mxu1 }
 0x63f   : > { %1492 = vxpose.xlu0.b32.end [2/2] (short) (narrow) %v1337_v18, 32 }
 0x64a   : > { %v1384_v20 = vpop.f32.mrb[16].mxu1 }
 0x64b   : > { %1523 = vxpose.xlu1.b32.start [1/2] (short) (narrow) %v1384_v20, 32  ;;  %v2648_v21 = vpop.f32.mrb[17].mxu1  ;;  %v2964_v20 = vld [vmem:[%s3823_s26 + $0x38] ss:$12 sps:$4 sm:$0xff]  }
 0x64c   : > { %v1387_v22 = vpop.f32.mrb[18].mxu1  ;;  %v2962_v21 = vld [vmem:[%s3823_s26 + $0x34] ss:$12 sps:$4 sm:$0xff]   ;;  %1907 = vmatprep.subr.bf16.mxu1 %v2964_v20 }
 0x64d   : > { %v2649_v31 = vpop.f32.mrb[19].mxu1  ;;  %1908 = vmatpush1.bf16.msra.mxu1 %v2962_v21 }
 0x64e   : > { %v2965_v31 = vld [vmem:[%s3823_s26 + $0x4c] ss:$12 sps:$4 sm:$0xff]  }
 0x64f   : > { %1524 = vxpose.xlu1.b32.end [2/2] (short) (narrow) %v1387_v22, 32  ;;  %v2967_v22 = vld [vmem:[%s3823_s26 + $0x50] ss:$12 sps:$4 sm:$0xff]  }
 0x650   : > { %1909 = vmatprep.subr.bf16.mxu1 %v2967_v22 }
 0x651   : > { %1910 = vmatpush1.bf16.msra.mxu1 %v2965_v31  ;;  %v1986_v31 = vsub.s32 3, %v3874_v30 }
 0x65a   : > { %v1434_v6 = vpop.f32.mrb[12].mxu0 }
 0x65b   : > { %1555 = vxpose.xlu0.b32.start [1/2] (short) (narrow) %v1434_v6, 32  ;;  %v2656_v8 = vpop.f32.mrb[13].mxu0  ;;  %v2970_v6 = vld [vmem:[%s3823_s26 + $0x68] ss:$12 sps:$4 sm:$0xff]  }
 0x65c   : > { %v1437_v62 = vpop.f32.mrb[14].mxu0  ;;  %v2968_v8 = vld [vmem:[%s3823_s26 + $0x64] ss:$12 sps:$4 sm:$0xff]   ;;  %1911 = vmatprep.subr.bf16.mxu1 %v2970_v6 }
 0x65d   : > { %v2657_v4 = vpop.f32.mrb[15].mxu0  ;;  %1912 = vmatpush1.bf16.msra.mxu1 %v2968_v8 }
 0x65e   : > { %v2971_v4 = vld [vmem:[%s3823_s26 + $0x7c] ss:$12 sps:$4 sm:$0xff]  }
 0x65f   : > { %1556 = vxpose.xlu0.b32.end [2/2] (short) (narrow) %v1437_v62, 32  ;;  %v2973_v62 = vld [vmem:[%s3823_s26 + $0x80] ss:$12 sps:$4 sm:$0xff]  }
 0x660   : > { %1913 = vmatprep.subr.bf16.mxu1 %v2973_v62 }
 0x661   : > { %1914 = vmatpush1.bf16.msra.mxu1 %v2971_v4 }
 0x66a   : > { %v1484_v23 = vpop.f32.mrb[20].mxu1 }
 0x66b   : > { %1587 = vxpose.xlu0.b32.start [1/2] (short) (narrow) %v1484_v23, 32  ;;  %v2664_v0 = vpop.f32.mrb[21].mxu1  ;;  %v2976_v23 = vld [vmem:[%s3823_s26 + $0x98] ss:$12 sps:$4 sm:$0xff]  }
 0x66c   : > { %v1487_v24 = vpop.f32.mrb[22].mxu1  ;;  %v2974_v0 = vld [vmem:[%s3823_s26 + $0x94] ss:$12 sps:$4 sm:$0xff]   ;;  %1915 = vmatprep.subr.bf16.mxu1 %v2976_v23 }
 0x66d   : > { %v2665_v25 = vpop.f32.mrb[23].mxu1  ;;  %1916 = vmatpush1.bf16.msra.mxu1 %v2974_v0 }
 0x66e   : > { %v2977_v25 = vld [vmem:[%s3823_s26 + $0xac] ss:$12 sps:$4 sm:$0xff]  }
 0x66f   : > { %1588 = vxpose.xlu0.b32.end [2/2] (short) (narrow) %v1487_v24, 32  ;;  %v2979_v24 = vld [vmem:[%s3823_s26 + $0xb0] ss:$12 sps:$4 sm:$0xff]  }
 0x670   : > { %1917 = vmatprep.subr.bf16.mxu1 %v2979_v24 }
 0x671   : > { %1918 = vmatpush1.bf16.msra.mxu1 %v2977_v25 }
 0x6bb   : > { %v1507_v38 = vpop.trf.xlu0 }
 0x6bc   : > { %1619 = vxpose.xlu0.b32.start [1/16] (narrow) %v1507_v38, 16  ;;  %v2987_v38 = vld [vmem:[%s3829_s14 + $0x18] sm:$0xff]  }
 0x6bf   : > { %v1508_v40 = vpop.trf.xlu0 }
 0x6c0   : > { %1620 = vxpose.xlu0.b32.cont [2/16] (narrow) %v1508_v40, 16  ;;  %v2989_v40 = vld [vmem:[%s3829_s14 + $0x20] sm:$0xff]  }
 0x6c3   : > { %v1509_v41 = vpop.trf.xlu0 }
 0x6c4   : > { %1621 = vxpose.xlu0.b32.cont [3/16] (narrow) %v1509_v41, 16  ;;  %v2990_v41 = vld [vmem:[%s3829_s14 + $0x68] sm:$0xff]  }
 0x6c7   : > { %v1510_v37 = vpop.trf.xlu0 }
 0x6c8   : > { %1622 = vxpose.xlu0.b32.cont [4/16] (narrow) %v1510_v37, 16 }
 0x6cb   : > { %v1539_v42 = vpop.trf.xlu1 }
 0x6cc   : > { %1623 = vxpose.xlu0.b32.cont [5/16] (narrow) %v1539_v42, 16 }
 0x6cf   : > { %v1540_v43 = vpop.trf.xlu1 }
 0x6d0   : > { %1624 = vxpose.xlu0.b32.cont [6/16] (narrow) %v1540_v43, 16 }
 0x6d3   : > { %v1541_v44 = vpop.trf.xlu1 }
 0x6d4   : > { %1625 = vxpose.xlu0.b32.cont [7/16] (narrow) %v1541_v44, 16 }
 0x6d7   : > { %v1542_v45 = vpop.trf.xlu1 }
 0x6d8   : > { %1626 = vxpose.xlu0.b32.cont [8/16] (narrow) %v1542_v45, 16 }
 0x6db   : > { %v1571_v46 = vpop.trf.xlu0 }
 0x6dc   : > { %1627 = vxpose.xlu0.b32.cont [9/16] (narrow) %v1571_v46, 16 }
 0x6df   : > { %v1572_v27 = vpop.trf.xlu0 }
 0x6e0   : > { %1628 = vxpose.xlu0.b32.cont [10/16] (narrow) %v1572_v27, 16  ;;  %v1788_v27 = vsub.s32 4, %v3874_v30 }
 0x6e3   : > { %v1573_v48 = vpop.trf.xlu0 }
 0x6e4   : > { %1629 = vxpose.xlu0.b32.cont [11/16] (narrow) %v1573_v48, 16 }
 0x6e7   : > { %v1574_v49 = vpop.trf.xlu0 }
 0x6e8   : > { %1630 = vxpose.xlu0.b32.cont [12/16] (narrow) %v1574_v49, 16 }
 0x6eb   : > { %v1603_v50 = vpop.trf.xlu0 }
 0x6ec   : > { %1631 = vxpose.xlu0.b32.cont [13/16] (narrow) %v1603_v50, 16  ;;  %v4063_v50 = vld [vmem:[%s3831_s21] sm:$0xff] }
 0x6ed   : > { %v1987_v8 = vrot.slane %v4063_v50, %v1986_v31 }
 0x6ef   : > { %v1604_v52 = vpop.trf.xlu0 }
 0x6f0   : > { %1632 = vxpose.xlu0.b32.cont [14/16] (narrow) %v1604_v52, 16  ;;  %v1789_v52 = vrot.slane %v4063_v50, %v1788_v27  ;;  %v2151_v27 = vsub.s32 6, %v3874_v30 }
 0x6f3   : > { %v1605_v53 = vpop.trf.xlu0 }
 0x6f4   : > { %1633 = vxpose.xlu0.b32.cont [15/16] (narrow) %v1605_v53, 16  ;;  %v1794_v53 = vsub.s32 5, %v3874_v30 }
 0x6f7   : > { %v1606_v51 = vpop.trf.xlu0 }
 0x6f8   : > { %1634 = vxpose.xlu0.b32.end [16/16] (narrow) %v1606_v51, 16 }
 0x73c   : > { %v1635_v54 = vpop.trf.xlu0 }
 0x740   : > { %v1636_v55 = vpop.trf.xlu0 }
 0x741   : > { %v1651_v47 = vpack.c.bf16 %v1636_v55, %v1635_v54 }
 0x743   : > { %2683 = vmatmul.mubr.bf16.vlgmr.msra.gmra.mrb[16].mxu0 %v1651_v47  ;;  %v1795_v47 = vrot.slane %v4063_v50, %v1794_v53 }
 0x744   : > { %2561 = vmatpush3.bf16.msra.mxu0 %v2981_v28 }
 0x745   : > { %2562 = vmatprep.subr.bf16.mxu0 %v2982_v29 }
 0x748   : > { %2563 = vmatpush3.bf16.msra.mxu0 %v2983_v33 }
 0x749   : > { %2564 = vmatprep.subr.bf16.mxu0 %v2984_v34 }
 0x74c   : > { %2565 = vmatpush3.bf16.msra.mxu0 %v2985_v35 }
 0x74d   : > { %2566 = vmatprep.subr.bf16.mxu0 %v2986_v36 }
 0x750   : > { %2567 = vmatpush3.bf16.msra.mxu0 %v2987_v38 }
 0x751   : > { %2568 = vmatprep.subr.bf16.mxu0 %v2988_v39 }
 0x754   : > { %2569 = vmatpush3.bf16.msra.mxu0 %v2989_v40 }
 0x755   : > { %2570 = vmatprep.subr.bf16.mxu0 %v2990_v41 }
 0x816   : > { %v1754_v59 = vpop.f32.mrb[16].mxu0 }
 0x817   : > { %v1755_v60 = vadd.f32 %v1754_v59, %v1671_v58  ;;  %v2684_v63 = vpop.f32.mrb[17].mxu0 }
 0x818   : > { %v1757_v1 = vpop.f32.mrb[18].mxu0  ;;  %v2991_v63 = vld [vmem:[%s3829_s14 + $0x28] sm:$0xff]  }
 0x819   : > { %v1758_v2 = vadd.f32 %v1757_v1, %v1671_v58  ;;  %v2685_v3 = vpop.f32.mrb[19].mxu0  ;;  %v1761_v7 = vadd.f32 %v3036_v5, %v1755_v60  ;;  %2571 = vmatpush3.bf16.msra.mxu0 %v2991_v63  ;;  %v2992_v1 = vld [vmem:[%s3829_s14 + $0x70] sm:$0xff]   ;;  %v2995_v5 = vld [vmem:[%s3829_s14 + $0x38] sm:$0xff]  }
 0x81a   : > { %2572 = vmatprep.subr.bf16.mxu0 %v2992_v1  ;;  %v2994_v3 = vld [vmem:[%s3829_s14 + $0x78] sm:$0xff]  }
 0x81b   : > { %1763 = vadd.xlane.f32.xlu1 %v1761_v7  ;;  %v1762_v61 = vadd.f32 %v3037_v9, %v1758_v2  ;;  %v2993_v2 = vld [vmem:[%s3829_s14 + $0x30] sm:$0xff]  }
 0x81d   : > { %1765 = vadd.xlane.f32.xlu0 %v1762_v61  ;;  %2573 = vmatpush3.bf16.msra.mxu0 %v2993_v2 }
 0x81e   : > { %2574 = vmatprep.subr.bf16.mxu0 %v2994_v3 }
 0x821   : > { %2575 = vmatpush3.bf16.msra.mxu0 %v2995_v5 }
 0x8a8   : > { %v1764_v12 = vpop.xlane.xlu1 %1763 }
 0x8a9   : > { %v1768_v13 = vmul.f32 0.0078125, %v1764_v12 }
 0x8aa   : > { %v1766_v14 = vpop.xlane.xlu0 %1765 }
 0x8ab   : > { %v4029_v15 = vsub.f32 %v1761_v7, %v1768_v13  ;;  %v1769_v16 = vmul.f32 0.0078125, %v1766_v14  ;;  %v1817_v7 = vsub.s32 2, %v3874_v30 }
 0x8ad   : > { %v4031_v17 = vsub.f32 %v1762_v61, %v1769_v16  ;;  %v1772_v18 = vmul.f32 %v4029_v15, %v4029_v15  ;;  %v1818_v9 = vrot.slane %v4063_v50, %v1817_v7  ;;  %v3039_v61 = vld [vmem:[%s3831_s21 + $0x8] sm:$0xff] }
 0x8ae   : > { %v1822_v10 = vrot.slane %v3039_v61, %v1817_v7 }
 0x8af   : > { %1774 = vadd.xlane.f32.xlu1 %v1772_v18  ;;  %v1773_v19 = vmul.f32 %v4031_v17, %v4031_v17 }
 0x8b3   : > { %1776 = vadd.xlane.f32.xlu1 %v1773_v19 }
 0x93c   : > { %v1775_v37 = vpop.xlane.xlu1 %1774 }
 0x93d   : > { %v1778_v42 = vmul.f32 0.0078125, %v1775_v37 }
 0x93f   : > { %v1780_v43 = vadd.f32 1e-05, %v1778_v42 }
 0x940   : > { %v1777_v44 = vpop.xlane.xlu1 %1776 }
 0x941   : > { %3028 = vrsqrt.f32 %v1780_v43  ;;  %v1779_v45 = vmul.f32 0.0078125, %v1777_v44 }
 0x943   : > { %v1781_v46 = vadd.f32 1e-05, %v1779_v45 }
 0x945   : > { %3030 = vrsqrt.f32 %v1781_v46 }
 0x94b   : > { %v3029_v48 = vpop.eup %3028 }
 0x94c   : > { %v1784_v49 = vmul.f32 %v3029_v48, %v4029_v15  ;;  %v2157_v48 = vsub.s32 7, %v3874_v30 }
 0x94e   : > { %v1790_v55 = vmul.f32 %v1789_v52, %v1784_v49  ;;  %v2152_v49 = vrot.slane %v4063_v50, %v2151_v27  ;;  %v2158_v53 = vrot.slane %v4063_v50, %v2157_v48 }
 0x94f   : > { %v3031_v51 = vpop.eup %3030 }
 0x950   : > { %v1785_v54 = vmul.f32 %v3031_v51, %v4031_v17  ;;  %v1796_v58 = vadd.f32 %v1795_v47, %v1790_v55 }
 0x952   : > { %v1791_v56 = vmul.f32 %v1789_v52, %v1785_v54 }
 0x954   : > { %v1797_v59 = vadd.f32 %v1795_v47, %v1791_v56 }
 0x956   : > { %v1798_v60 = vpack.c.bf16 %v1797_v59, %v1796_v58 }
 0x958   : > { %1936 = vmatmul.mubr.bf16.vlgmr.msra.gmra.mrb[24].mxu1 %v1798_v60 }
 0xa2b   : > { %v1937_v11 = vpop.f32.mrb[24].mxu1 }
 0xa2c   : > { %v1938_v57 = vadd.f32 %v1937_v11, %v1818_v9  ;;  %v1939_v32 = vpop.f32.mrb[25].mxu1 }
 0xa2d   : > { %v1940_v12 = vadd.f32 %v1939_v32, %v1822_v10  ;;  %v1941_v13 = vpop.f32.mrb[26].mxu1 }
 0xa2e   : > { %v1942_v14 = vadd.f32 %v1941_v13, %v1818_v9  ;;  %v1943_v15 = vpop.f32.mrb[27].mxu1  ;;  %v1946_v17 = vmax.f32 %v1938_v57, 0.0 }
 0xa2f   : > { %v1944_v16 = vadd.f32 %v1943_v15, %v1822_v10  ;;  %v1947_v19 = vmax.f32 %v1940_v12, 0.0  ;;  %v2507_v12 = vld [vmem:[%s4257_s25] ss:$0 sm:$0xff] (!%p2506_p11) }
 0xa30   : > { %v1948_v18 = vmax.f32 %v1942_v14, 0.0  ;;  %v2508_v14 = vld [vmem:[%s4258_s20 + $0x1] ss:$0 sm:$0xff] (!%p2506_p11) }
 0xa31   : > { %v1949_v20 = vmax.f32 %v1944_v16, 0.0 }
 0xa32   : > { %v1950_v21 = vpack.c.bf16 %v1948_v18, %v1946_v17 }
 0xa33   : > { %v1951_v22 = vpack.c.bf16 %v1949_v20, %v1947_v19 }
 0xa35   : > { %2116 = vmatprep.mubr.bf16.mxu0 %v1951_v22 }
 0xa36   : > { %2117 = vmatmul.mubr.bf16.vlgmr.msra.gmra.mrb[20].mxu0 %v1950_v21 }
 0xb09   : > { %v2576_v6 = vpop.f32.mrb[20].mxu0 }
 0xb0a   : > { %v2577_v62 = vpop.f32.mrb[21].mxu0 }
 0xb0b   : > { %v2578_v4 = vadd.f32 %v2577_v62, %v2576_v6  ;;  %v2579_v23 = vpop.f32.mrb[22].mxu0 }
 0xb0c   : > { %v2580_v0 = vpop.f32.mrb[23].mxu0 }
 0xb0d   : > { %v2119_v24 = vadd.f32 %v2578_v4, %v1987_v8  ;;  %v2581_v25 = vadd.f32 %v2580_v0, %v2579_v23 }
 0xb0f   : > { %v2122_v26 = vadd.f32 %v2581_v25, %v1987_v8  ;;  %v2125_v28 = vadd.f32 %v2119_v24, %v1796_v58 }
 0xb11   : > { %2127 = vadd.xlane.f32.xlu1 %v2125_v28  ;;  %v2126_v29 = vadd.f32 %v2122_v26, %v1797_v59 }
 0xb15   : > { %2129 = vadd.xlane.f32.xlu1 %v2126_v29 }
 0xb9e   : > { %v2128_v33 = vpop.xlane.xlu1 %2127 }
 0xb9f   : > { %v2131_v34 = vmul.f32 0.0078125, %v2128_v33 }
 0xba1   : > { %v2133_v35 = vsub.f32 %v2125_v28, %v2131_v34 }
 0xba2   : > { %v2130_v36 = vpop.xlane.xlu1 %2129 }
 0xba3   : > { %v2132_v38 = vmul.f32 0.0078125, %v2130_v36  ;;  %v2135_v39 = vmul.f32 %v2133_v35, %v2133_v35 }
 0xba5   : > { %v2134_v40 = vsub.f32 %v2126_v29, %v2132_v38  ;;  %2137 = vadd.xlane.f32.xlu1 %v2135_v39 }
 0xba7   : > { %v2136_v41 = vmul.f32 %v2134_v40, %v2134_v40 }
 0xba9   : > { %2139 = vadd.xlane.f32.xlu1 %v2136_v41 }
 0xc32   : > { %v2138_v37 = vpop.xlane.xlu1 %2137 }
 0xc33   : > { %v2141_v42 = vmul.f32 0.0078125, %v2138_v37 }
 0xc35   : > { %v2143_v43 = vadd.f32 1e-05, %v2141_v42 }
 0xc36   : > { %v2140_v44 = vpop.xlane.xlu1 %2139 }
 0xc37   : > { %3032 = vrsqrt.f32 %v2143_v43  ;;  %v2142_v45 = vmul.f32 0.0078125, %v2140_v44 }
 0xc39   : > { %v2144_v46 = vadd.f32 1e-05, %v2142_v45 }
 0xc3b   : > { %3034 = vrsqrt.f32 %v2144_v46 }
 0xc41   : > { %v3033_v52 = vpop.eup %3032 }
 0xc42   : > { %v2147_v51 = vmul.f32 %v3033_v52, %v2133_v35 }
 0xc44   : > { %v2153_v54 = vmul.f32 %v2152_v49, %v2147_v51 }
 0xc45   : > { %v3035_v55 = vpop.eup %3034 }
 0xc46   : > { %v2159_v47 = vadd.f32 %v2158_v53, %v2153_v54  ;;  %v2148_v56 = vmul.f32 %v3035_v55, %v2134_v40  ;;  %2166 = sbr.rel (%p2506_p11) target bundleno = 3460 (0xd84), region = 80 }
 0xc48   : > { %2161 = vst [vmem:[#allocation2] sm:$0xff] %v2159_v47  ;;  %v2154_v58 = vmul.f32 %v2152_v49, %v2148_v56  ;;  %2169 = vadd.xlane.f32.xlu0 (!%p2506_p11), %v2159_v47 }
 0xc4a   : > { %v2160_v59 = vadd.f32 %v2158_v53, %v2154_v58 }
 0xc4c   : > { %2162 = vst [vmem:[#allocation2 + $0x8] sm:$0xff] %v2160_v59  ;;  %2171 = vadd.xlane.f32.xlu0 (!%p2506_p11), %v2160_v59 }
 0xcd5   : > { %v2170_v30 = vpop.xlane.xlu0 %2169 }
 0xcd6   : > { %v2173_v60 = vmul.f32 0.0078125, %v2170_v30 }
 0xcd8   : > { %v2175_v63 = vsub.f32 %v2159_v47, %v2173_v60 }
 0xcd9   : > { %v2172_v1 = vpop.xlane.xlu0 %2171 }
 0xcda   : > { %v2174_v2 = vmul.f32 0.0078125, %v2172_v1  ;;  %v2177_v50 = vmul.f32 %v2175_v63, %v2175_v63 }
 0xcdc   : > { %v2176_v3 = vsub.f32 %v2160_v59, %v2174_v2  ;;  %2179 = vadd.xlane.f32.xlu1 %v2177_v50 }
 0xcde   : > { %v2178_v5 = vmul.f32 %v2176_v3, %v2176_v3 }
 0xce0   : > { %2181 = vadd.xlane.f32.xlu1 %v2178_v5 }
 0xd69   : > { %v2180_v7 = vpop.xlane.xlu1 %2179 }
 0xd6a   : > { %v2183_v9 = vmul.f32 0.0078125, %v2180_v7 }
 0xd6c   : > { %v2185_v61 = vadd.f32 1e-05, %v2183_v9 }
 0xd6d   : > { %v2182_v10 = vpop.xlane.xlu1 %2181 }
 0xd6e   : > { %3040 = vrsqrt.f32 %v2185_v61  ;;  %v2184_v11 = vmul.f32 0.0078125, %v2182_v10 }
 0xd70   : > { %v2186_v57 = vadd.f32 1e-05, %v2184_v11 }
 0xd72   : > { %3042 = vrsqrt.f32 %v2186_v57 }
 0xd78   : > { %v3041_v32 = vpop.eup %3040 }
 0xd79   : > { %v2189_v13 = vmul.f32 %v3041_v32, %v2175_v63 }
 0xd7b   : > { %v2195_v15 = vmul.f32 %v2507_v12, %v2189_v13 }
 0xd7c   : > { %v3043_v16 = vpop.eup %3042 }
 0xd7d   : > { %v2201_v17 = vadd.f32 %v2508_v14, %v2195_v15  ;;  %v2190_v18 = vmul.f32 %v3043_v16, %v2176_v3 }
 0xd7f   : > { %2203 = vst [vmem:[%s3838_s13] sm:$0xff] %v2201_v17  ;;  %v2196_v19 = vmul.f32 %v2507_v12, %v2190_v18 }
 0xd81   : > { %v2202_v20 = vadd.f32 %v2508_v14, %v2196_v19 }
 0xd83   : > { %2204 = vst [vmem:[%s3838_s13 + $0x8] sm:$0xff] %v2202_v20 }
 0xd84 PF: > { %s4259_s27 = sld [smem:[#allocation25_spill]]  ;;  %s4260_s15 = sld [smem:[#allocation27_spill]] }
 0xd85   : > { %s4261_s30 = sld [smem:[#allocation37_spill]]  ;;  %s2219_s16 = sshll.u32 %s3838_s13, 4  ;;  %s4099_s16 = int_to_ptr.vmem [resolvable:$true] %s2219_s16 }
 0xd86   : > { %s2206_s17 = scalar_lea.sflag [#allocation5], %s3799_s8  ;;  %s3224_s14 = scalar_lea.vmem %s4099_s16, 256 }
 0xd87   : > { %p3225_p12 = scmp.ne.s32.totalorder %s4099_s16, %s3224_s14  ;;  %s3379_s6 = smov [#allocation14]  }
 0xd88   : > { %s3228_s21 = sshll.u32 %s3379_s6, 4  ;;  %s3229_s21 = int_to_ptr.vmem [resolvable:$false] %s3228_s21 }
 0xd89   : > { %s3230_s18 = scalar_lea.vmem %s3229_s21, 512  ;;  %p3231_p9 = scmp.lt.s32.totalorder %s4099_s16, %s3229_s21 }
 0xd8a   : > { %s2517_s11 = sshll.u32 %s4259_s27, 8  ;;  %p4263_p13 = scmp.ne.s32.totalorder %s4260_s15, 0 }
 0xd8b   : > { %s4262_s12 = smov %s4261_s30  ;;  %s4096_s26 = scalar_lea.hbm %s4261_s30, %s2517_s11 }
 0xd8c   : > { %p3226_p5 = pnand %p3225_p12, %p4263_p13  ;;  %p3232_p7 = scmp.lt.s32.totalorder %s3230_s18, %s3224_s14 }
 0xd8e   : > { %p3227_p6 = pneg %p3226_p5  ;;  %p3233_p1 = por %p3232_p7, %p3231_p9 }
 0xd90   : > { %p3234_p8 = pnand %p3233_p1, %p3227_p6 }
 0xd92   : > { %3237 = shalt.err (!%p3234_p8)
}
 0xd93   : > { %s3238_s13 = scalar_lea.hbm %s4096_s26, 256  ;;  %s3242_s24 = scalar_lea.hbm %s4262_s12, 512 }
 0xd94   : > { %p3239_p10 = scmp.ne.s32.totalorder %s4096_s26, %s3238_s13  ;;  %p3243_p2 = scmp.lt.u32.totalorder %s4096_s26, %s4262_s12 }
 0xd95   : > { %p3244_p0 = scmp.lt.u32.totalorder %s3242_s24, %s3238_s13  ;;  %p3246_p12 = scmp.lt.u32.totalorder %s3238_s13, %s4096_s26 }
 0xd96   : > { %p3240_p3 = pnand %p3239_p10, %p4263_p13 }
 0xd97   : > { %p3245_p11 = por %p3244_p0, %p3243_p2 }
 0xd98   : > { %p3241_p4 = pneg %p3240_p3 }
 0xd99   : > { %p3247_p5 = por %p3246_p12, %p3245_p11 }
 0xd9b   : > { %p3248_p6 = pnand %p3247_p5, %p3241_p4 }
 0xd9d   : > { %3251 = shalt.err (!%p3248_p6)
}
 0xd9e   : > { %s3380_s19 = smov 128   ;;  %s3381_s27 = smov 8  }
 0xd9f   : > { %2706 = dma.vmem_to_hbm [thread:$0]  (%p4263_p13), %s4099_s16, 256, %s4096_s26, %s2206_s17, %s3380_s19, %s3380_s19, %s3381_s27  }
 0xda0 PF: > { %s4264_s11 = sld [smem:[#allocation26_spill]]  ;;  %s4265_s1 = sld [smem:[#allocation23_spill]] }
 0xda1   : > { %s4266_s7 = sld [smem:[#allocation28_spill]] }
 0xda6   : > { %p2732_p9 = scmp.ge.s32.totalorder %s4264_s11, 2  ;;  %s2234_s30 = sand.u32 1, %s4265_s1  }
 0xda7   : > { %p4267_p7 = scmp.ne.s32.totalorder %s4266_s7, 0  ;;  %s2235_s14 = scalar_lea.sflag [#allocation5], %s2234_s30 }
 0xda9   : > { %p2728_p1 = pnand %p2732_p9, %p4267_p7 }
 0xdab   : > { %3317 = dma.done.wait (!%p2728_p1), %s2235_s14, 256  }
 0xdac   : > { %3319 = vsyncadd (!%p2728_p1), %s2235_s14, 4294967040  ;;  %s32_s11 = sadd.s32 1, %s4264_s11   ;;  %s4268_s24 = sld [smem:[#allocation21_spill]] }
 0xdad   : > { %p29_p8 = scmp.ge.s32.totalorder %s32_s11, 6   ;;  %s4269_s25 = sld [smem:[#allocation22_spill]] }
 0xdae   : > { %s4270_s26 = sld [smem:[#allocation32_spill]]  ;;  %s4271_s8 = sld [smem:[#allocation33_spill]] }
 0xdaf   : > { %s4272_s15 = sld [smem:[#allocation29_spill]]  ;;  %s4273_s16 = sld [smem:[#allocation31_spill]] }
 0xdb0   : > { %s4274_s27 = smov %s3338_s28  ;;  %s4275_s28 = smov %s3342_s29 }
 0xdb1   : > { %s4277_s30 = smov %s3354_s9  ;;  %31 = sbr.rel (!%p29_p8) target bundleno = 20 (0x14), region = 162 }
 0xdb4   : > { %s4276_s29 = smov %s4271_s8  ;;  %s4278_s8 = smov %s3358_s10 }
 0xdb5   : > { %s4279_s9 = smov %s4272_s15  ;;  %s4280_s10 = smov %s4273_s16 }
 0xdb8   :  { %2240 = vsyncpa [#allocation4], 1 }
 0xdb9   :  { %2242 = vsyncpa [#allocation4 + $0x1], 1 }
 0xdba   :  { %2243 = vsyncpa [#allocation7], 1 }
 0xdbb   :  { %2245 = vsyncpa [#allocation7 + $0x1], 1 }
 0xdbc   :  { %2246 = vsyncpa [#allocation10], 1 }
 0xdbd   :  { %2248 = vsyncpa [#allocation10 + $0x1], 1 }
 0xdbe   :  { %2249 = vsyncpa [#allocation13], 1 }
 0xdbf   :  { %2251 = vsyncpa [#allocation13 + $0x1], 1 }
 0xdc0   :  { %2252 = vsyncpa [#allocation5], 1 }
 0xdc1   :  { %2254 = vsyncpa [#allocation5 + $0x1], 1 }

</bundles_post_ra>
